<compile_context>
chip_gen: v5e
topology: v5e:2x2
jax: 0.10.0
libtpu: 0.0.40
codegen_flags: <defaults>
</compile_context>

<pallas_src>
import functools

import jax
import jax.numpy as jnp
from jax.experimental import pallas as pl
from jax.experimental.pallas import tpu as pltpu

# ----------------------------- configuration --------------------------------
Q_NDIM = 2                      # dof_ndim -> state z has 2*Q_NDIM features
ANGULAR_DIMS = (0,)             # angular q dims get (cos, sin) encoding
NON_ANGULAR_DIMS = tuple(sorted(set(range(Q_NDIM)) - set(ANGULAR_DIMS)))
HIDDEN = 32                     # hidden_size (small for the demo)
NUM_LAYERS = 3                  # number of FCtanh layers
IN_FEATS = 2 * Q_NDIM + len(ANGULAR_DIMS)   # CosSin output width
OUT_FEATS = 2 * Q_NDIM
LANE = 128                      # TPU lane width

assert HIDDEN % 8 == 0, "slab packing assumes sublane-aligned hidden size"


def _round_up(x, m):
    return -(-x // m) * m


# ----------------------- packed weight slab layout ---------------------------
def _slab_offsets():
    """Row offsets of each parameter inside the (SLAB_ROWS, HIDDEN) slab."""
    offs, r = {}, 0
    for li in range(1, NUM_LAYERS):        # hidden FCtanh layers (square weights)
        offs[f"w{li}"] = r
        r += HIDDEN
    offs["w0"] = r                         # first layer weight (HIDDEN, IN_FEATS)
    r += HIDDEN
    offs["w_out"] = r                      # final Linear weight (OUT_FEATS, HIDDEN)
    r += OUT_FEATS
    r = _round_up(r, 8)
    offs["b0"] = r
    r += HIDDEN
    for li in range(1, NUM_LAYERS):
        offs[f"b{li}"] = r
        r += HIDDEN
    offs["b_out"] = r
    r += OUT_FEATS
    return offs, _round_up(r, 8)


_OFFS, SLAB_ROWS = _slab_offsets()


def pack_params(params):
    """Pack [(w, b), ...] (w: (in,out), b: (1,out)) into one f32 slab."""
    assert len(params) == NUM_LAYERS + 1
    slab = jnp.zeros((SLAB_ROWS, HIDDEN), jnp.float32)
    w0, b0 = params[0]
    slab = slab.at[_OFFS["w0"]:_OFFS["w0"] + HIDDEN, :IN_FEATS].set(w0.T)
    slab = slab.at[_OFFS["b0"]:_OFFS["b0"] + HIDDEN, 0:1].set(b0.T)
    for li in range(1, NUM_LAYERS):
        w, b = params[li]
        slab = slab.at[_OFFS[f"w{li}"]:_OFFS[f"w{li}"] + HIDDEN, :].set(w.T)
        slab = slab.at[_OFFS[f"b{li}"]:_OFFS[f"b{li}"] + HIDDEN, 0:1].set(b.T)
    w, b = params[NUM_LAYERS]
    slab = slab.at[_OFFS["w_out"]:_OFFS["w_out"] + OUT_FEATS, :].set(w.T)
    slab = slab.at[_OFFS["b_out"]:_OFFS["b_out"] + OUT_FEATS, 0:1].set(b.T)
    return slab


# ------------------------------- the kernel ---------------------------------
def _nn_kernel(slab_ref, z_ref, o_ref, *, chunk):
    """One feature-major batch block: folded CosSin+Linear0, FCtanh stack, Linear.

    slab_ref : (SLAB_ROWS, HIDDEN)  all weights/biases, resident across grid
    z_ref    : (2*Q_NDIM, BLOCK)    state, batch on the 128-lane axis
    o_ref    : (OUT_FEATS, BLOCK)   time derivative
    """
    # ---- hoisted (once per block): static slices of the weight slab --------
    w0 = slab_ref[_OFFS["w0"]:_OFFS["w0"] + HIDDEN, 0:IN_FEATS]          # (H, 5)
    b0 = slab_ref[_OFFS["b0"]:_OFFS["b0"] + HIDDEN, 0:1]                 # (H, 1)
    w_hid = [slab_ref[_OFFS[f"w{li}"]:_OFFS[f"w{li}"] + HIDDEN, :]
             for li in range(1, NUM_LAYERS)]                             # (H, H)
    b_hid = [slab_ref[_OFFS[f"b{li}"]:_OFFS[f"b{li}"] + HIDDEN, 0:1]
             for li in range(1, NUM_LAYERS)]                             # (H, 1)
    w_out = slab_ref[_OFFS["w_out"]:_OFFS["w_out"] + OUT_FEATS, :]       # (O, H)
    b_out = slab_ref[_OFFS["b_out"]:_OFFS["b_out"] + OUT_FEATS, 0:1]     # (O, 1)
    w0_cols = [w0[:, k:k + 1] for k in range(IN_FEATS)]                  # (H, 1) each

    block = z_ref.shape[1]
    # Inner loop over lane-dense compute chunks (static offsets -> free slices).
    for lo in range(0, block, chunk):
        zc = z_ref[:, lo:lo + chunk].astype(jnp.float32)                 # (2Q, C)

        # CosSin(only_q=False) folded into the first Linear as broadcast-FMAs:
        #   feature order = [cos(q_ang), sin(q_ang), q_nonang, v]
        feats = (
            [jnp.cos(zc[d:d + 1, :]) for d in ANGULAR_DIMS]
            + [jnp.sin(zc[d:d + 1, :]) for d in ANGULAR_DIMS]
            + [zc[d:d + 1, :] for d in NON_ANGULAR_DIMS]
            + [zc[Q_NDIM + j:Q_NDIM + j + 1, :] for j in range(Q_NDIM)]
        )
        h = b0
        for wc, f in zip(w0_cols, feats):      # unrolled at trace time
            h = h + wc * f                     # (H,1)*(1,C) -> (H,C) on the VPU
        h = jnp.tanh(h)

        # Remaining FCtanh layers: MXU matmuls with lane-dense rhs.
        for w, b in zip(w_hid, b_hid):
            h = jnp.tanh(jnp.dot(w, h, preferred_element_type=jnp.float32) + b)

        out = jnp.dot(w_out, h, preferred_element_type=jnp.float32) + b_out
        o_ref[:, lo:lo + chunk] = out.astype(o_ref.dtype)


# ------------------------------- the wrappers --------------------------------
def nn_forward_fm(t, z_fm, slab, *, max_block=2048, min_parallel_blocks=1):
    """Feature-major hot path: z_fm is (2*Q_NDIM, N), returns (2*Q_NDIM, N).

    No HBM-side transpose/pad happens here when N is a multiple of 128.
    Set min_parallel_blocks=2 on v7x (2 TensorCores per chip).
    """
    assert t.ndim == 0 and z_fm.ndim == 2 and z_fm.shape[0] == 2 * Q_NDIM
    n = z_fm.shape[1]

    # ---- block / chunk selection (all Python ints) --------------------------
    n_lane = _round_up(n, LANE)
    num_blocks = max(-(-n_lane // max_block),
                     min(min_parallel_blocks, n_lane // LANE))
    block = _round_up(-(-(n_lane // LANE) // num_blocks), 1) * LANE
    block = _round_up(n_lane // num_blocks if n_lane % num_blocks == 0
                      else block, LANE)
    block = max(LANE, _round_up(-(-n_lane // num_blocks), LANE))
    n_pad = num_blocks * block
    chunk = 512
    while block % chunk:
        chunk //= 2                      # always terminates at 128 (block % 128 == 0)

    if n_pad != n:
        z_p = jnp.zeros((2 * Q_NDIM, n_pad), z_fm.dtype).at[:, :n].set(z_fm)
    else:
        z_p = z_fm

    cost = pl.CostEstimate(
        flops=2 * n_pad * (IN_FEATS * HIDDEN
                           + (NUM_LAYERS - 1) * HIDDEN * HIDDEN
                           + HIDDEN * OUT_FEATS),
        transcendentals=n_pad * (NUM_LAYERS * HIDDEN + 2 * len(ANGULAR_DIMS)),
        bytes_accessed=n_pad * (2 * Q_NDIM) * 4 * 2 + SLAB_ROWS * HIDDEN * 4,
    )

    out = pl.pallas_call(
        functools.partial(_nn_kernel, chunk=chunk),
        out_shape=jax.ShapeDtypeStruct((OUT_FEATS, n_pad), z_fm.dtype),
        grid_spec=pltpu.PrefetchScalarGridSpec(
            num_scalar_prefetch=0,
            grid=(n_pad // block,),
            in_specs=[
                # weight slab: full block + constant index_map -> fetched once
                pl.BlockSpec((SLAB_ROWS, HIDDEN), lambda i: (0, 0)),
                # state, feature-major: batch on the lane axis
                pl.BlockSpec((2 * Q_NDIM, block), lambda i: (0, i)),
            ],
            out_specs=pl.BlockSpec((OUT_FEATS, block), lambda i: (0, i)),
        ),
        compiler_params=pltpu.CompilerParams(
            dimension_semantics=("parallel",)),
        cost_estimate=cost,
    )(slab, z_p)

    return out if n_pad == n else out[:, :n]


def nn_forward(t, z, slab, **kw):
    """Module-compatible adapter: z is (N, 2*q_ndim) batch-major (boundary transposes only)."""
    assert t.ndim == 0 and z.ndim == 2 and z.shape[-1] == 2 * Q_NDIM
    return nn_forward_fm(t, z.T, slab, **kw).T


def integrate(z0, ts, slab, **kw):
    """Fixed-step RK4 rollout on the `ts` grid; state stays feature-major throughout.

    z0: (bs, 2, D) initial state, ts: (T,).  Returns (bs, T, 2, D).
    """
    # TODO(synk): adaptive-tolerance odeint (rtol) has no Pallas equivalent; torchdiffeq
    # 'rk4' is fixed-step on the ts grid, which is what this implements.
    assert z0.ndim == 3 and ts.ndim == 1
    bs = z0.shape[0]
    z_fm = z0.reshape(bs, -1).T                      # ONE boundary transpose

    def deriv(t, z):
        return nn_forward_fm(t, z, slab, **kw)

    def rk4(z, tp):
        t0, t1 = tp[0], tp[1]
        dt = t1 - t0
        k1 = deriv(t0, z)
        k2 = deriv(t0 + 0.5 * dt, z + 0.5 * dt * k1)
        k3 = deriv(t0 + 0.5 * dt, z + 0.5 * dt * k2)
        k4 = deriv(t1, z + dt * k3)
        zn = z + (dt / 6.0) * (k1 + 2.0 * k2 + 2.0 * k3 + k4)
        return zn, zn

    t_pairs = jnp.stack([ts[:-1], ts[1:]], axis=1)
    _, traj = jax.lax.scan(rk4, z_fm, t_pairs)       # (T-1, 2D, bs)
    traj = jnp.concatenate([z_fm[None], traj], axis=0)
    # ONE boundary transpose back to the module's (bs, T, 2, D) layout.
    return traj.transpose(2, 0, 1).reshape(bs, ts.shape[0], 2, Q_NDIM)


# --------------------------- parameter construction --------------------------
def init_params(key):
    """Deterministic init mimicking orthogonal_init=True, zero_bias=False."""
    chs = [IN_FEATS] + NUM_LAYERS * [HIDDEN] + [OUT_FEATS]
    ortho = jax.nn.initializers.orthogonal()
    params = []
    for i in range(len(chs) - 1):
        key, kw, kb = jax.random.split(key, 3)
        w = ortho(kw, (chs[i], chs[i + 1]), jnp.float32)          # (in, out)
        b = 0.01 * jax.random.normal(kb, (1, chs[i + 1]), jnp.float32)
        params.append((w, b))
    return params


# ------------------------------ pure-JAX reference ---------------------------
def nn_forward_ref(t, z, params):
    q, v = z[:, :Q_NDIM], z[:, Q_NDIM:]
    parts = ([jnp.cos(q[:, d:d + 1]) for d in ANGULAR_DIMS]
             + [jnp.sin(q[:, d:d + 1]) for d in ANGULAR_DIMS]
             + [q[:, d:d + 1] for d in NON_ANGULAR_DIMS]
             + [v])
    h = jnp.concatenate(parts, axis=-1)
    for i in range(NUM_LAYERS):
        w, b = params[i]
        h = jnp.tanh(h @ w + b)
    w, b = params[NUM_LAYERS]
    return h @ w + b


def integrate_ref(z0, ts, params):
    bs = z0.shape[0]
    zb = z0.reshape(bs, -1)
    traj = [zb]
    for i in range(ts.shape[0] - 1):
        t0, t1 = ts[i], ts[i + 1]
        dt = t1 - t0
        k1 = nn_forward_ref(t0, zb, params)
        k2 = nn_forward_ref(t0 + 0.5 * dt, zb + 0.5 * dt * k1, params)
        k3 = nn_forward_ref(t0 + 0.5 * dt, zb + 0.5 * dt * k2, params)
        k4 = nn_forward_ref(t1, zb + dt * k3, params)
        zb = zb + (dt / 6.0) * (k1 + 2.0 * k2 + 2.0 * k3 + k4)
        traj.append(zb)
    return jnp.stack(traj, axis=1).reshape(bs, ts.shape[0], 2, Q_NDIM)


# ------------------------------------ main -----------------------------------
if __name__ == "__main__":
    key = jax.random.PRNGKey(0)
    key, kz, kz0 = jax.random.split(key, 3)

    params = init_params(key)
    slab = pack_params(params)

    # ---- single forward call, feature-major hot path ------------------------
    N = 1024                                         # lane-aligned -> zero pad/copy
    z = jax.random.normal(kz, (N, 2 * Q_NDIM), jnp.float32)
    z_fm = z.T                                       # one-time layout change
    t = jnp.float32(0.0)                             # unused (time-independent)

    out_fm = jax.block_until_ready(nn_forward_fm(t, z_fm, slab))
    ref = nn_forward_ref(t, z, params)
    assert out_fm.shape == (2 * Q_NDIM, N)
    assert jnp.allclose(out_fm.T, ref, atol=1e-5, rtol=1e-5), "forward mismatch"

    # ---- module-compatible batch-major adapter ------------------------------
    out_bm = jax.block_until_ready(nn_forward(t, z, slab))
    assert jnp.allclose(out_bm, ref, atol=1e-5, rtol=1e-5), "adapter mismatch"

    # ---- short RK4 rollout with the state kept feature-major ----------------
    bs = 256
    z0 = jax.random.normal(kz0, (bs, 2, Q_NDIM), jnp.float32)
    ts = jnp.linspace(0.0, 0.3, 4, dtype=jnp.float32)
    traj = jax.block_until_ready(integrate(z0, ts, slab))
    traj_ref = integrate_ref(z0, ts, params)
    assert traj.shape == (bs, ts.shape[0], 2, Q_NDIM)
    assert jnp.allclose(traj, traj_ref, atol=1e-4, rtol=1e-4), "rollout mismatch"

    print("KERNEL_OK")
</pallas_src>

<mosaic_0001>
module attributes {stable_mosaic.version = 11 : i64} {
  func.func @_nn_kernel(%arg0: i32, %arg1: memref<208x32xf32, #tpu.memory_space<vmem>>, %arg2: memref<4x1024xf32, #tpu.memory_space<vmem>>, %arg3: memref<4x1024xf32, #tpu.memory_space<vmem>>) attributes {dimension_semantics = [#tpu.dimension_semantics<parallel>], iteration_bounds = array<i64: 1>, scalar_prefetch = 0 : i64, scratch_operands = 0 : i64, tpu.core_type = #tpu.core_type<tc>, window_params = [{pipeline_mode = #tpu.pipeline_mode<synchronous>, transform_indices = @transform_0, window_bounds = array<i64: 208, 32>}, {transform_indices = @transform_1, window_bounds = array<i64: 4, 1024>}, {transform_indices = @transform_2, window_bounds = array<i64: 4, 1024>}]} {
    %c64 = arith.constant 64 : index
    %c0 = arith.constant 0 : index
    %0 = vector.load %arg1[%c64, %c0] : memref<208x32xf32, #tpu.memory_space<vmem>>, vector<32x5xf32>
    %c104 = arith.constant 104 : index
    %c0_0 = arith.constant 0 : index
    %1 = vector.load %arg1[%c104, %c0_0] : memref<208x32xf32, #tpu.memory_space<vmem>>, vector<32x1xf32>
    %c0_1 = arith.constant 0 : index
    %c0_2 = arith.constant 0 : index
    %2 = vector.load %arg1[%c0_1, %c0_2] : memref<208x32xf32, #tpu.memory_space<vmem>>, vector<32x32xf32>
    %c32 = arith.constant 32 : index
    %c0_3 = arith.constant 0 : index
    %3 = vector.load %arg1[%c32, %c0_3] : memref<208x32xf32, #tpu.memory_space<vmem>>, vector<32x32xf32>
    %c136 = arith.constant 136 : index
    %c0_4 = arith.constant 0 : index
    %4 = vector.load %arg1[%c136, %c0_4] : memref<208x32xf32, #tpu.memory_space<vmem>>, vector<32x1xf32>
    %c168 = arith.constant 168 : index
    %c0_5 = arith.constant 0 : index
    %5 = vector.load %arg1[%c168, %c0_5] : memref<208x32xf32, #tpu.memory_space<vmem>>, vector<32x1xf32>
    %c96 = arith.constant 96 : index
    %c0_6 = arith.constant 0 : index
    %6 = vector.load %arg1[%c96, %c0_6] : memref<208x32xf32, #tpu.memory_space<vmem>>, vector<4x32xf32>
    %c200 = arith.constant 200 : index
    %c0_7 = arith.constant 0 : index
    %7 = vector.load %arg1[%c200, %c0_7] : memref<208x32xf32, #tpu.memory_space<vmem>>, vector<4x1xf32>
    %8 = vector.extract_strided_slice %0 {offsets = [0, 0], sizes = [32, 1], strides = [1, 1]} : vector<32x5xf32> to vector<32x1xf32>
    %9 = vector.extract_strided_slice %0 {offsets = [0, 1], sizes = [32, 1], strides = [1, 1]} : vector<32x5xf32> to vector<32x1xf32>
    %10 = vector.extract_strided_slice %0 {offsets = [0, 2], sizes = [32, 1], strides = [1, 1]} : vector<32x5xf32> to vector<32x1xf32>
    %11 = vector.extract_strided_slice %0 {offsets = [0, 3], sizes = [32, 1], strides = [1, 1]} : vector<32x5xf32> to vector<32x1xf32>
    %12 = vector.extract_strided_slice %0 {offsets = [0, 4], sizes = [32, 1], strides = [1, 1]} : vector<32x5xf32> to vector<32x1xf32>
    %c0_8 = arith.constant 0 : index
    %c0_9 = arith.constant 0 : index
    %13 = vector.load %arg2[%c0_8, %c0_9] : memref<4x1024xf32, #tpu.memory_space<vmem>>, vector<4x512xf32>
    %14 = vector.extract_strided_slice %13 {offsets = [0, 0], sizes = [1, 512], strides = [1, 1]} : vector<4x512xf32> to vector<1x512xf32>
    %15 = math.cos %14 : vector<1x512xf32>
    %16 = vector.extract_strided_slice %13 {offsets = [0, 0], sizes = [1, 512], strides = [1, 1]} : vector<4x512xf32> to vector<1x512xf32>
    %17 = math.sin %16 : vector<1x512xf32>
    %18 = vector.extract_strided_slice %13 {offsets = [1, 0], sizes = [1, 512], strides = [1, 1]} : vector<4x512xf32> to vector<1x512xf32>
    %19 = vector.extract_strided_slice %13 {offsets = [2, 0], sizes = [1, 512], strides = [1, 1]} : vector<4x512xf32> to vector<1x512xf32>
    %20 = vector.extract_strided_slice %13 {offsets = [3, 0], sizes = [1, 512], strides = [1, 1]} : vector<4x512xf32> to vector<1x512xf32>
    %21 = vector.broadcast %8 : vector<32x1xf32> to vector<32x512xf32>
    %22 = vector.broadcast %15 : vector<1x512xf32> to vector<32x512xf32>
    %23 = arith.mulf %21, %22 : vector<32x512xf32>
    %24 = vector.broadcast %1 : vector<32x1xf32> to vector<32x512xf32>
    %25 = arith.addf %24, %23 : vector<32x512xf32>
    %26 = vector.broadcast %9 : vector<32x1xf32> to vector<32x512xf32>
    %27 = vector.broadcast %17 : vector<1x512xf32> to vector<32x512xf32>
    %28 = arith.mulf %26, %27 : vector<32x512xf32>
    %29 = arith.addf %25, %28 : vector<32x512xf32>
    %30 = vector.broadcast %10 : vector<32x1xf32> to vector<32x512xf32>
    %31 = vector.broadcast %18 : vector<1x512xf32> to vector<32x512xf32>
    %32 = arith.mulf %30, %31 : vector<32x512xf32>
    %33 = arith.addf %29, %32 : vector<32x512xf32>
    %34 = vector.broadcast %11 : vector<32x1xf32> to vector<32x512xf32>
    %35 = vector.broadcast %19 : vector<1x512xf32> to vector<32x512xf32>
    %36 = arith.mulf %34, %35 : vector<32x512xf32>
    %37 = arith.addf %33, %36 : vector<32x512xf32>
    %38 = vector.broadcast %12 : vector<32x1xf32> to vector<32x512xf32>
    %39 = vector.broadcast %20 : vector<1x512xf32> to vector<32x512xf32>
    %40 = arith.mulf %38, %39 : vector<32x512xf32>
    %41 = arith.addf %37, %40 : vector<32x512xf32>
    %42 = math.tanh %41 : vector<32x512xf32>
    %cst = arith.constant dense<0.000000e+00> : vector<32x512xf32>
    %43 = tpu.matmul %2, %42, %cst {dimension_numbers = #tpu.dot_dimension_numbers<[1], [0], [0], [1], [0, 0, 1, 1], [], []>} : vector<32x32xf32>, vector<32x512xf32>, vector<32x512xf32> -> vector<32x512xf32>
    %44 = vector.broadcast %4 : vector<32x1xf32> to vector<32x512xf32>
    %45 = arith.addf %43, %44 : vector<32x512xf32>
    %46 = math.tanh %45 : vector<32x512xf32>
    %cst_10 = arith.constant dense<0.000000e+00> : vector<32x512xf32>
    %47 = tpu.matmul %3, %46, %cst_10 {dimension_numbers = #tpu.dot_dimension_numbers<[1], [0], [0], [1], [0, 0, 1, 1], [], []>} : vector<32x32xf32>, vector<32x512xf32>, vector<32x512xf32> -> vector<32x512xf32>
    %48 = vector.broadcast %5 : vector<32x1xf32> to vector<32x512xf32>
    %49 = arith.addf %47, %48 : vector<32x512xf32>
    %50 = math.tanh %49 : vector<32x512xf32>
    %cst_11 = arith.constant dense<0.000000e+00> : vector<4x512xf32>
    %51 = tpu.matmul %6, %50, %cst_11 {dimension_numbers = #tpu.dot_dimension_numbers<[1], [0], [0], [1], [0, 0, 1, 1], [], []>} : vector<4x32xf32>, vector<32x512xf32>, vector<4x512xf32> -> vector<4x512xf32>
    %52 = vector.broadcast %7 : vector<4x1xf32> to vector<4x512xf32>
    %53 = arith.addf %51, %52 : vector<4x512xf32>
    %c0_12 = arith.constant 0 : index
    %c0_13 = arith.constant 0 : index
    %54 = vector.load %arg3[%c0_12, %c0_13] : memref<4x1024xf32, #tpu.memory_space<vmem>>, vector<4x512xf32>
    tpu.vector_store %arg3[%c0_12, %c0_13], %53 {strides = array<i32>} : memref<4x1024xf32, #tpu.memory_space<vmem>>, vector<4x512xf32>,
    %c0_14 = arith.constant 0 : index
    %c512 = arith.constant 512 : index
    %55 = vector.load %arg2[%c0_14, %c512] : memref<4x1024xf32, #tpu.memory_space<vmem>>, vector<4x512xf32>
    %56 = vector.extract_strided_slice %55 {offsets = [0, 0], sizes = [1, 512], strides = [1, 1]} : vector<4x512xf32> to vector<1x512xf32>
    %57 = math.cos %56 : vector<1x512xf32>
    %58 = vector.extract_strided_slice %55 {offsets = [0, 0], sizes = [1, 512], strides = [1, 1]} : vector<4x512xf32> to vector<1x512xf32>
    %59 = math.sin %58 : vector<1x512xf32>
    %60 = vector.extract_strided_slice %55 {offsets = [1, 0], sizes = [1, 512], strides = [1, 1]} : vector<4x512xf32> to vector<1x512xf32>
    %61 = vector.extract_strided_slice %55 {offsets = [2, 0], sizes = [1, 512], strides = [1, 1]} : vector<4x512xf32> to vector<1x512xf32>
    %62 = vector.extract_strided_slice %55 {offsets = [3, 0], sizes = [1, 512], strides = [1, 1]} : vector<4x512xf32> to vector<1x512xf32>
    %63 = vector.broadcast %8 : vector<32x1xf32> to vector<32x512xf32>
    %64 = vector.broadcast %57 : vector<1x512xf32> to vector<32x512xf32>
    %65 = arith.mulf %63, %64 : vector<32x512xf32>
    %66 = vector.broadcast %1 : vector<32x1xf32> to vector<32x512xf32>
    %67 = arith.addf %66, %65 : vector<32x512xf32>
    %68 = vector.broadcast %9 : vector<32x1xf32> to vector<32x512xf32>
    %69 = vector.broadcast %59 : vector<1x512xf32> to vector<32x512xf32>
    %70 = arith.mulf %68, %69 : vector<32x512xf32>
    %71 = arith.addf %67, %70 : vector<32x512xf32>
    %72 = vector.broadcast %10 : vector<32x1xf32> to vector<32x512xf32>
    %73 = vector.broadcast %60 : vector<1x512xf32> to vector<32x512xf32>
    %74 = arith.mulf %72, %73 : vector<32x512xf32>
    %75 = arith.addf %71, %74 : vector<32x512xf32>
    %76 = vector.broadcast %11 : vector<32x1xf32> to vector<32x512xf32>
    %77 = vector.broadcast %61 : vector<1x512xf32> to vector<32x512xf32>
    %78 = arith.mulf %76, %77 : vector<32x512xf32>
    %79 = arith.addf %75, %78 : vector<32x512xf32>
    %80 = vector.broadcast %12 : vector<32x1xf32> to vector<32x512xf32>
    %81 = vector.broadcast %62 : vector<1x512xf32> to vector<32x512xf32>
    %82 = arith.mulf %80, %81 : vector<32x512xf32>
    %83 = arith.addf %79, %82 : vector<32x512xf32>
    %84 = math.tanh %83 : vector<32x512xf32>
    %cst_15 = arith.constant dense<0.000000e+00> : vector<32x512xf32>
    %85 = tpu.matmul %2, %84, %cst_15 {dimension_numbers = #tpu.dot_dimension_numbers<[1], [0], [0], [1], [0, 0, 1, 1], [], []>} : vector<32x32xf32>, vector<32x512xf32>, vector<32x512xf32> -> vector<32x512xf32>
    %86 = vector.broadcast %4 : vector<32x1xf32> to vector<32x512xf32>
    %87 = arith.addf %85, %86 : vector<32x512xf32>
    %88 = math.tanh %87 : vector<32x512xf32>
    %cst_16 = arith.constant dense<0.000000e+00> : vector<32x512xf32>
    %89 = tpu.matmul %3, %88, %cst_16 {dimension_numbers = #tpu.dot_dimension_numbers<[1], [0], [0], [1], [0, 0, 1, 1], [], []>} : vector<32x32xf32>, vector<32x512xf32>, vector<32x512xf32> -> vector<32x512xf32>
    %90 = vector.broadcast %5 : vector<32x1xf32> to vector<32x512xf32>
    %91 = arith.addf %89, %90 : vector<32x512xf32>
    %92 = math.tanh %91 : vector<32x512xf32>
    %cst_17 = arith.constant dense<0.000000e+00> : vector<4x512xf32>
    %93 = tpu.matmul %6, %92, %cst_17 {dimension_numbers = #tpu.dot_dimension_numbers<[1], [0], [0], [1], [0, 0, 1, 1], [], []>} : vector<4x32xf32>, vector<32x512xf32>, vector<4x512xf32> -> vector<4x512xf32>
    %94 = vector.broadcast %7 : vector<4x1xf32> to vector<4x512xf32>
    %95 = arith.addf %93, %94 : vector<4x512xf32>
    %c0_18 = arith.constant 0 : index
    %c512_19 = arith.constant 512 : index
    %96 = vector.load %arg3[%c0_18, %c512_19] : memref<4x1024xf32, #tpu.memory_space<vmem>>, vector<4x512xf32>
    tpu.vector_store %arg3[%c0_18, %c512_19], %95 {strides = array<i32>} : memref<4x1024xf32, #tpu.memory_space<vmem>>, vector<4x512xf32>,
    return
  }
  func.func @transform_0(%arg0: i32) -> (i32, i32) {
    %c0_i32 = arith.constant 0 : i32
    %c0_i32_0 = arith.constant 0 : i32
    %c0_i32_1 = arith.constant 0 : i32
    return %c0_i32, %c0_i32_0 : i32, i32
  }
  func.func @transform_1(%arg0: i32) -> (i32, i32) {
    %c0_i32 = arith.constant 0 : i32
    %c0_i32_0 = arith.constant 0 : i32
    return %c0_i32, %arg0 : i32, i32
  }
  func.func @transform_2(%arg0: i32) -> (i32, i32) {
    %c0_i32 = arith.constant 0 : i32
    %c0_i32_0 = arith.constant 0 : i32
    return %c0_i32, %arg0 : i32, i32
  }
}

</mosaic_0001>

<bundles_post_ra>
// kernel: tpu_custom_call.1
= control target key start
LH: loop header
LB: loop body
LE: loop exit
PB: predicated region body
PF: predicated region fallthrough
CT: control target
= control target key end

     0   :  { %v4534_v3 = vmov 0   ;;  %s4531_s0 = inlined_call_operand.vmem [shape: f32[208,32], index: 0, kind: input, shape index: {}]   ;;  %s4532_s1 = inlined_call_operand.vmem [shape: f32[4,1024], index: 1, kind: input, shape index: {}]   ;;  %s4533_s2 = inlined_call_operand.hbm [shape: f32[4,1024], index: 2, kind: output, shape index: {}]  }
   0x1   :  { %v19_v0 = vld [vmem:[%s4531_s0 + $0x80] sm:$0xff]  ;;  %v15_v1 = vld [vmem:[%s4531_s0 + $0x58] sm:$0xff]  ;;  %v3059_v2 = vld [vmem:[%s4531_s0 + $0x48] sm:$0xff]  ;;  %2779 = vset.pattern.permute.xlu2 %v4534_v3  ;;  %2777 = vset.pattern.permute.xlu1 %v4534_v3 }
   0x2   :  { %2776 = vset.pattern.permute.xlu0 %v4534_v3  ;;  %725 = vperm.xlu1 %2777, %v19_v0  }
   0x3   :  { %675 = vperm.xlu0 %2776, %v15_v1   ;;  %665 = vperm.xlu2 %2779, %v3059_v2  }
   0x4   :  { %7 = vsyncpa [#allocation3], 0  ;;  %v14_v4 = vld [vmem:[%s4531_s0 + $0x50] sm:$0xff]  ;;  %v18_v5 = vld [vmem:[%s4531_s0 + $0x78] sm:$0xff]  ;;  %v3024_v6 = vmov 1   ;;  %v3025_v8 = vmov 2  }
   0x5   :  { %v3074_v7 = vld [vmem:[%s4531_s0 + $0x40] sm:$0xff]  ;;  %v17_v9 = vld [vmem:[%s4531_s0 + $0x70] sm:$0xff]  ;;  %v16_v11 = vld [vmem:[%s4531_s0 + $0x68] sm:$0xff]  ;;  %v3026_v13 = vmov 3   ;;  %v3027_v18 = vmov 4  }
   0x6   :  { %v3085_v10 = vld [vmem:[%s4532_s1] sm:$0xff]  ;;  %v4536_v23 = vmov 683565275   ;;  %v4542_v25 = vmov 2475754826  }
   0x7   :  { %v43_v12 = vand.u32 2139095040, %v3085_v10  ;;  %v40_v21 = vand.u32 2147483647, %v3085_v10  ;;  %v4538_v27 = vmov 2102212464  }
   0x8   :  { %v4546_v29 = vmov 920167782   ;;  %v4540_v32 = vmov 2131351028   ;;  %v4544_v38 = vmov 1326507024  }
   0x9   :  { %v44_v14 = vshrl.u32 %v43_v12, 23  ;;  %v47_v37 = vand.u32 8388607, %v40_v21 }
   0xa   :  { %2778 = vset.pattern.permute.xlu1 %v3024_v6 }
   0xb   :  { %670 = vperm.xlu0 %2776, %v14_v4   ;;  %720 = vperm.xlu2 %2779, %v18_v5   ;;  %v2668_v15 = vadd.s32 4294967169, %v44_v14  ;;  %v48_v45 = vor.u32 8388608, %v47_v37 }
   0xc   :  { %757 = vperm.xlu1 %2778, %v15_v1  }
   0xd   :  { %v50_v16 = vadd.s32 1, %v2668_v15  ;;  %v88_v52 = vshll.u32 %v48_v45, 8 }
   0xf   :  { %vm51_vm0 = vcmp.gt.s32.totalorder %v50_v16, 0  ;;  %v89_v55 = vand.u32 65535, %v88_v52  ;;  %v90_v58 = vshrl.u32 %v88_v52, 16 }
  0x10   :  { %v52_v17 = vsel %vm51_vm0, %v50_v16, 0 }
  0x11   :  { %v54_v19 = vand.u32 31, %v52_v17  ;;  %v3100_v22 = vshrl.u32 %v52_v17, 5 }
  0x13   :  { %2780 = vset.pattern.permute.xlu0 %v3024_v6  ;;  %660 = vperm.xlu2 %2779, %v3074_v7   ;;  %v3097_v20 = vsub.s32 32, %v54_v19  ;;  %v57_v24 = vshll.u32 %v4536_v23, %v54_v19  ;;  %v60_v26 = vshll.u32 %v4542_v25, %v54_v19  ;;  %v66_v28 = vshll.u32 %v4538_v27, %v54_v19 }
  0x14   :  { %2781 = vset.pattern.permute.xlu1 %v3025_v8  ;;  %753 = vperm.xlu0 %2780, %v14_v4   ;;  %v63_v34 = vshll.u32 %v4540_v32, %v54_v19  ;;  %v69_v36 = vshll.u32 %v4546_v29, %v54_v19  ;;  %vm75_vm1 = vcmp.lt.s32.totalorder %v3100_v22, 4  ;;  %vm72_vm2 = vcmp.lt.s32.totalorder %v3100_v22, 1 }
  0x15   :  { %819 = vperm.xlu1 %2781, %v15_v1   ;;  %v67_v30 = vshrl.u32 %v4546_v29, %v3097_v20  ;;  %v58_v31 = vshrl.u32 %v4542_v25, %v3097_v20  ;;  %v61_v33 = vshrl.u32 %v4540_v32, %v3097_v20  ;;  %v64_v35 = vshrl.u32 %v4538_v27, %v3097_v20 }
  0x16   :  { %v70_v39 = vshrl.u32 %v4544_v38, %v3097_v20  ;;  %vm74_vm3 = vcmp.lt.s32.totalorder %v3100_v22, 3  ;;  %vm73_vm4 = vcmp.lt.s32.totalorder %v3100_v22, 2 }
  0x17   :  { %v68_v40 = vor.u32 %v67_v30, %v66_v28  ;;  %v3120_v41 = vor.u32 %v58_v31, %v57_v24  ;;  %v3122_v42 = vor.u32 %v61_v33, %v60_v26  ;;  %v65_v43 = vor.u32 %v64_v35, %v63_v34 }
  0x18   :  { %v71_v44 = vor.u32 %v70_v39, %v69_v36  ;;  %v56_v33 = vshrl.u32 %v4536_v23, %v3097_v20 }
  0x19   :  { %v81_v46 = vsel %vm75_vm1, %v68_v40, 920167782  ;;  %v80_v47 = vsel %vm72_vm2, %v3120_v41, %v3122_v42  ;;  %v84_v49 = vsel %vm72_vm2, %v3122_v42, %v65_v43  ;;  %v77_v36 = vsel %vm75_vm1, %v65_v43, 2102212464 }
  0x1a   :  { %v82_v48 = vsel %vm74_vm3, %v65_v43, %v81_v46  ;;  %v85_v50 = vsel %vm75_vm1, %v71_v44, 1326507024  ;;  %v76_v39 = vsel %vm72_vm2, %v56_v33, %v3120_v41  ;;  %v3170_v43 = vld [vmem:[%s4532_s1 + $0x8] sm:$0xff]  ;;  %vm3241_vm1 = vcmp.le.f32.partialorder %v40_v21, 0.7853982 }
  0x1b   :  { %2783 = vset.pattern.permute.xlu2 %v3024_v6  ;;  %v86_v51 = vsel %vm74_vm3, %v68_v40, %v85_v50  ;;  %v83_v53 = vsel %vm73_vm4, %v80_v47, %v82_v48  ;;  %v78_v40 = vsel %vm74_vm3, %v3122_v42, %v77_v36  ;;  %v197_v41 = vand.u32 2139095040, %v3170_v43 }
  0x1c   :  { %2784 = vset.pattern.permute.xlu0 %v3025_v8  ;;  %749 = vperm.xlu2 %2783, %v3059_v2   ;;  %v87_v54 = vsel %vm73_vm4, %v84_v49, %v86_v51  ;;  %v114_v56 = vshrl.u32 %v83_v53, 16  ;;  %v113_v59 = vand.u32 65535, %v83_v53  ;;  %v79_v46 = vsel %vm73_vm4, %v76_v39, %v78_v40 }
  0x1d   :  { %2782 = vset.pattern.permute.xlu1 %v4534_v3  ;;  %815 = vperm.xlu0 %2784, %v14_v4   ;;  %v92_v57 = vshrl.u32 %v87_v54, 16  ;;  %v91_v61 = vand.u32 65535, %v87_v54  ;;  %v133_v47 = vmul.u32 %v88_v52, %v79_v46  ;;  %v198_v50 = vshrl.u32 %v197_v41, 23 }
  0x1e   :  { %715 = vperm.xlu1 %2782, %v17_v9   ;;  %v116_v60 = vmul.u32 %v114_v56, %v89_v55  ;;  %v115_v63 = vmul.u32 %v113_v59, %v89_v55  ;;  %v117_v0 = vmul.u32 %v113_v59, %v90_v58  ;;  %vm42_vm2 = vcmp.lt.s32.totalorder %v3085_v10, 0 }
  0x1f   :  { %v94_v62 = vmul.u32 %v92_v57, %v89_v55  ;;  %v96_v12 = vmul.u32 %v92_v57, %v90_v58  ;;  %v2671_v42 = vadd.s32 4294967169, %v198_v50 }
  0x20   :  { %v120_v19 = vshrl.u32 %v116_v60, 16  ;;  %v122_v30 = vshrl.u32 %v117_v0, 16 }
  0x21   :  { %v97_v5 = vshll.u32 %v94_v62, 16  ;;  %v98_v26 = vshrl.u32 %v94_v62, 16  ;;  %v204_v54 = vadd.s32 1, %v2671_v42 }
  0x23   :  { %vm205_vm10 = vcmp.gt.s32.totalorder %v204_v54, 0 }
  0x24   :  { %2786 = vset.pattern.permute.xlu2 %v4534_v3  ;;  %v206_v57 = vsel %vm205_vm10, %v204_v54, 0 }
  0x25   :  { %2789 = vset.pattern.permute.xlu0 %v3026_v13  ;;  %710 = vperm.xlu2 %2786, %v16_v11   ;;  %v118_v11 = vmul.u32 %v114_v56, %v90_v58 }
  0x26   :  { %2785 = vset.pattern.permute.xlu1 %v3026_v13  ;;  %877 = vperm.xlu0 %2789, %v14_v4  }
  0x27   :  { %881 = vperm.xlu1 %2785, %v15_v1  }
  0x2d   :  { %2788 = vset.pattern.permute.xlu2 %v3025_v8 }
  0x2e   :  { %811 = vperm.xlu2 %2788, %v3059_v2   ;;  %869 = vperm.xlu0 %2789, %v3074_v7  }
  0x2f   :  { %2787 = vset.pattern.permute.xlu1 %v3024_v6  ;;  %v121_v6 = vshll.u32 %v117_v0, 16  ;;  %v194_v0 = vand.u32 2147483647, %v3170_v43 }
  0x30   :  { %745 = vperm.xlu1 %2787, %v3074_v7  }
  0x36   :  { %807 = vperm.xlu2 %2788, %v3074_v7   ;;  %2794 = vset.pattern.permute.xlu0 %v4534_v3 }
  0x38   :  { %2790 = vset.pattern.permute.xlu1 %v3027_v18 }
  0x39   :  { %941 = vperm.xlu1 %2790, %v15_v1   ;;  %v119_v1 = vshll.u32 %v116_v60, 16 }
  0x3b   :  { %vm123_vm5 = vc.u32 %v115_v63, %v119_v1 }
  0x3e   :  { %2792 = vset.pattern.permute.xlu2 %v3027_v18 }
  0x3f   :  { %937 = vperm.xlu2 %2792, %v14_v4   ;;  %v95_v4 = vmul.u32 %v91_v61, %v90_v58  ;;  %v208_v58 = vand.u32 31, %v206_v57 }
  0x41   :  { %2791 = vset.pattern.permute.xlu1 %v3026_v13  ;;  %v99_v8 = vshll.u32 %v95_v4, 16  ;;  %v124_v13 = vsel %vm123_vm5, 1, %v4534_v3  ;;  %v100_v34 = vshrl.u32 %v95_v4, 16 }
  0x42   :  { %873 = vperm.xlu1 %2791, %v3059_v2   ;;  %v126_v15 = vadd.s32 %v124_v13, %v118_v11  ;;  %v217_v11 = vshll.u32 %v4540_v32, %v208_v58 }
  0x47   :  { %929 = vperm.xlu2 %2792, %v3074_v7   ;;  %v125_v7 = vadd.s32 %v119_v1, %v115_v63  ;;  %v220_v1 = vshll.u32 %v4538_v27, %v208_v58 }
  0x49   :  { %vm127_vm7 = vc.u32 %v125_v7, %v121_v6  ;;  %v129_v45 = vadd.s32 %v125_v7, %v121_v6  ;;  %v211_v6 = vshll.u32 %v4536_v23, %v208_v58  ;;  %v214_v7 = vshll.u32 %v4542_v25, %v208_v58 }
  0x4a   :  { %2793 = vset.pattern.permute.xlu1 %v3027_v18  ;;  %v128_v17 = vsel %vm127_vm7, 1, %v4534_v3 }
  0x4b   :  { %933 = vperm.xlu1 %2793, %v3059_v2   ;;  %v93_v2 = vmul.u32 %v91_v61, %v89_v55  ;;  %v130_v24 = vadd.s32 %v128_v17, %v126_v15  ;;  %v3178_v61 = vsub.s32 32, %v208_v58 }
  0x4d   :  { %vm101_vm6 = vc.u32 %v93_v2, %v97_v5  ;;  %v103_v9 = vadd.s32 %v97_v5, %v93_v2  ;;  %v131_v31 = vadd.s32 %v130_v24, %v120_v19  ;;  %v221_v2 = vshrl.u32 %v4546_v29, %v3178_v61 }
  0x4e   :  { %v102_v14 = vsel %vm101_vm6, 1, %v4534_v3  ;;  %v3186_v5 = vshrl.u32 %v206_v57, 5  ;;  %v218_v13 = vshrl.u32 %v4538_v27, %v3178_v61  ;;  %v224_v15 = vshrl.u32 %v4544_v38, %v3178_v61 }
  0x4f   :  { %2796 = vset.pattern.permute.xlu2 %v4534_v3  ;;  %vm105_vm8 = vc.u32 %v103_v9, %v99_v8  ;;  %v104_v16 = vadd.s32 %v102_v14, %v96_v12  ;;  %v132_v37 = vadd.s32 %v131_v31, %v122_v30  ;;  %v212_v8 = vshrl.u32 %v4542_v25, %v3178_v61 }
  0x50   :  { %v106_v18 = vsel %vm105_vm8, 1, %v4534_v3  ;;  %v215_v9 = vshrl.u32 %v4540_v32, %v3178_v61  ;;  %v223_v14 = vshll.u32 %v4546_v29, %v208_v58  ;;  %v222_v19 = vor.u32 %v221_v2, %v220_v1 }
  0x51   :  { %v108_v28 = vadd.s32 %v106_v18, %v104_v16  ;;  %v136_v20 = vadd.s32 1, %v132_v37  ;;  %v201_v24 = vand.u32 8388607, %v194_v0  ;;  %vm229_vm13 = vcmp.lt.s32.totalorder %v3186_v5, 4 }
  0x52   :  { %v3203_v30 = vor.u32 %v212_v8, %v211_v6  ;;  %v3205_v31 = vor.u32 %v215_v9, %v214_v7  ;;  %v3207_v33 = vor.u32 %v218_v13, %v217_v11  ;;  %vm226_vm14 = vcmp.lt.s32.totalorder %v3186_v5, 1 }
  0x53   :  { %2795 = vset.pattern.permute.xlu1 %v4534_v3  ;;  %v109_v35 = vadd.s32 %v108_v28, %v98_v26  ;;  %vm228_vm15 = vcmp.lt.s32.totalorder %v3186_v5, 3  ;;  %v202_v40 = vor.u32 8388608, %v201_v24  ;;  %vm227_vm0 = vcmp.lt.s32.totalorder %v3186_v5, 2 }
  0x54   :  { %v234_v46 = vsel %vm226_vm14, %v3203_v30, %v3205_v31  ;;  %vm183_vm6 = vweird.f32 %v3085_v10 }
  0x55   :  { %v110_v44 = vadd.s32 %v109_v35, %v100_v34  ;;  %v225_v34 = vor.u32 %v224_v15, %v223_v14 }
  0x57   :  { %vm135_vm9 = vc.u32 %v110_v44, %v129_v45  ;;  %v134_v4 = vadd.s32 %v129_v45, %v110_v44 }
  0x58   :  { %v137_v48 = vsel %vm135_vm9, %v136_v20, %v132_v37  ;;  %v235_v37 = vsel %vm229_vm13, %v222_v19, 920167782 }
  0x59   :  { %v138_v49 = vadd.s32 %v137_v48, %v133_v47  ;;  %v236_v20 = vsel %vm228_vm15, %v3207_v33, %v235_v37  ;;  %v238_v47 = vsel %vm226_vm14, %v3205_v31, %v3207_v33  ;;  %v239_v48 = vsel %vm229_vm13, %v225_v34, 1326507024 }
  0x5a   :  { %v237_v54 = vsel %vm227_vm0, %v234_v46, %v236_v20 }
  0x5b   :  { %v139_v51 = vadd.s32 536870912, %v138_v49  ;;  %v267_v14 = vand.u32 65535, %v237_v54 }
  0x5d   :  { %v3173_v53 = vshrl.u32 %v139_v51, 30  ;;  %v3233_v51 = vshll.u32 %v202_v40, 8 }
  0x5f   :  { %v141_v22 = vshll.u32 %v3173_v53, 30 }
  0x61   :  { %v142_v56 = vsub.s32 %v138_v49, %v141_v22  ;;  %v240_v49 = vsel %vm228_vm15, %v222_v19, %v239_v48  ;;  %v243_v22 = vand.u32 65535, %v3233_v51  ;;  %v210_v48 = vshrl.u32 %v4536_v23, %v3178_v61 }
  0x62   :  { %v241_v50 = vsel %vm227_vm0, %v238_v47, %v240_v49 }
  0x63   :  { %vm143_vm11 = vcmp.lt.s32.totalorder %v142_v56, 0  ;;  %v144_v52 = vsub.s32 0, %v142_v56  ;;  %v245_v57 = vand.u32 65535, %v241_v50  ;;  %v246_v58 = vshrl.u32 %v241_v50, 16 }
  0x64   :  { %v230_v61 = vsel %vm226_vm14, %v210_v48, %v3203_v30  ;;  %v824_v30 = vperm.slane %v3085_v10, 1  ;;  %v885_v48 = vperm.slane %v3085_v10, 6 }
  0x65   :  { %v145_v59 = vsel %vm143_vm11, %v144_v52, %v142_v56  ;;  %v3247_v1 = vmul.u32 %v246_v58, %v243_v22 }
  0x66   :  { %v146_v60 = vclz %v145_v59  ;;  %v164_v59 = vsub.s32 4, %v3173_v53 }
  0x67   :  { %v251_v8 = vshll.u32 %v3247_v1, 16 }
  0x68   :  { %v2669_v63 = vadd.s32 4294967294, %v146_v60  ;;  %v165_v9 = vsel %vm42_vm2, %v164_v59, %v3173_v53 }
  0x69   :  { %v167_v19 = vsel %vm3241_vm1, 0, %v165_v9 }
  0x6a   :  { %vm2670_vm12 = vcmp.lt.s32.totalorder %v2669_v63, 0  ;;  %v184_v47 = vand.u32 3, %v167_v19 }
  0x6b   :  { %v149_v12 = vsel %vm2670_vm12, 0, %v2669_v63  ;;  %v247_v63 = vmul.u32 %v245_v57, %v243_v22 }
  0x6c   :  { %v150_v16 = vsub.s32 32, %v149_v12  ;;  %v151_v17 = vshll.u32 %v142_v56, %v149_v12  ;;  %v154_v18 = vsub.s32 4294967266, %v149_v12  ;;  %v244_v56 = vshrl.u32 %v3233_v51, 16 }
  0x6d   :  { %vm255_vm3 = vc.u32 %v247_v63, %v251_v8  ;;  %v257_v13 = vadd.s32 %v251_v8, %v247_v63  ;;  %vm185_vm7 = vcmp.lt.s32.totalorder %v184_v47, 2  ;;  %vm186_vm8 = vcmp.eq.s32.totalorder %v184_v47, 0 }
  0x6e   :  { %v152_v26 = vshrl.u32 %v134_v4, %v150_v16  ;;  %v155_v28 = vadd.s32 127, %v154_v18  ;;  %v3249_v2 = vmul.u32 %v245_v57, %v244_v56  ;;  %v268_v4 = vshrl.u32 %v237_v54, 16 }
  0x6f   :  { %v250_v18 = vmul.u32 %v246_v58, %v244_v56  ;;  %v256_v24 = vsel %vm255_vm3, 1, %v4534_v3  ;;  %v3267_v40 = vmul.u32 %v267_v14, %v244_v56  ;;  %v252_v54 = vshrl.u32 %v3247_v1, 16 }
  0x70   :  { %v153_v35 = vor.u32 %v152_v26, %v151_v17  ;;  %v156_v36 = vshll.u32 %v155_v28, 23  ;;  %v253_v12 = vshll.u32 %v3249_v2, 16  ;;  %v3259_v15 = vmul.u32 %v268_v4, %v243_v22  ;;  %v3264_v28 = vpop.permute.xlu2 %665 }
  0x71   :  { %v492_v26 = vadd.s32 3, %v167_v19  ;;  %v258_v37 = vadd.s32 %v256_v24, %v250_v18  ;;  %v272_v57 = vmul.u32 %v268_v4, %v244_v56  ;;  %v275_v58 = vshll.u32 %v3267_v40, 16 }
  0x72   :  { %v157_v44 = vor.u32 4788187, %v156_v36  ;;  %v160_v45 = vcvt.s32.f32 %v153_v35  ;;  %vm259_vm4 = vc.u32 %v257_v13, %v253_v12  ;;  %v269_v35 = vmul.u32 %v267_v14, %v243_v22 }
  0x73   :  { %v273_v36 = vshll.u32 %v3259_v15, 16  ;;  %v260_v46 = vsel %vm259_vm4, 1, %v4534_v3  ;;  %vm189_vm9 = vcmp.eq.s32.totalorder %v184_v47, 2  ;;  %v884_v18 = vperm.slane %v3085_v10, 2 }
  0x74   :  { %v3176_v55 = vpop.permute.xlu1 %725  ;;  %v158_v41 = vand.u32 2147483647, %v157_v44  ;;  %v262_v22 = vadd.s32 %v260_v46, %v258_v37  ;;  %v276_v24 = vshrl.u32 %v3267_v40, 16 }
  0x75   :  { %4591 = vst [vmem:[#allocation5_spill] sm:$0xff] %v3176_v55  ;;  %vm277_vm5 = vc.u32 %v269_v35, %v273_v36  ;;  %v279_v63 = vadd.s32 %v273_v36, %v269_v35  ;;  %v3313_v46 = vperm.slane %v884_v18, 2 }
  0x76   :  { %v161_v42 = vmul.f32 %v160_v45, %v158_v41  ;;  %v231_v41 = vsel %vm229_vm13, %v3207_v33, 2102212464  ;;  %v263_v12 = vadd.s32 %v262_v22, %v252_v54  ;;  %v3316_v54 = vpop.permute.xlu0 %675 }
  0x77   :  { %v232_v33 = vsel %vm228_vm15, %v3205_v31, %v231_v41  ;;  %vm281_vm12 = vc.u32 %v279_v63, %v275_v58  ;;  %v274_v31 = vshrl.u32 %v3259_v15, 16  ;;  %v3303_v35 = vadd.s32 %v279_v63, %v275_v58  ;;  %4599 = vst [vmem:[#allocation11_spill] sm:$0xff] %v3316_v54 }
  0x78   :  { %v162_v60 = vxor.u32 2147483648, %v161_v42  ;;  %v282_v13 = vsel %vm281_vm12, 1, %v4534_v3 }
  0x7a   :  { %v163_v7 = vsel %vm42_vm2, %v162_v60, %v161_v42  ;;  %v493_v42 = vand.u32 3, %v492_v26  ;;  %v278_v60 = vsel %vm277_vm5, 1, %v4534_v3  ;;  %vm195_vm2 = vcmp.le.f32.partialorder %v194_v0, 0.7853982 }
  0x7b   :  { %v166_v21 = vsel %vm3241_vm1, %v3085_v10, %v163_v7  ;;  %v280_v4 = vadd.s32 %v278_v60, %v272_v57  ;;  %v3287_v7 = vpop.permute.xlu2 %720  ;;  %vm196_vm1 = vcmp.lt.s32.totalorder %v3170_v43, 0 }
  0x7c   :  { %v168_v11 = vmul.f32 %v166_v21, %v166_v21  ;;  %vm494_vm10 = vcmp.lt.s32.totalorder %v493_v42, 2  ;;  %vm498_vm11 = vcmp.eq.s32.totalorder %v493_v42, 2  ;;  %4597 = vst [vmem:[#allocation9_spill] sm:$0xff] %v3287_v7  ;;  %vm495_vm13 = vcmp.eq.s32.totalorder %v493_v42, 0 }
  0x7d   :  { %v284_v26 = vadd.s32 %v282_v13, %v280_v4 }
  0x7e   :  { %v3180_v62 = vpop.permute.xlu1 %757  ;;  %v169_v16 = vmul.f32 -0.001358992, %v168_v11  ;;  %v176_v17 = vmul.f32 -0.00019511016, %v168_v11 }
  0x7f   :  { %4592 = vst [vmem:[#allocation6_spill] sm:$0xff] %v3180_v62 }
  0x80   :  { %v170_v53 = vadd.f32 0.041655596, %v169_v16  ;;  %v177_v34 = vadd.f32 0.008332121, %v176_v17 }
  0x82   :  { %v171_v44 = vmul.f32 %v170_v53, %v168_v11  ;;  %v178_v45 = vmul.f32 %v177_v34, %v168_v11 }
  0x83   :  { %v3331_v63 = vpop.permute.xlu2 %660 }
  0x84   :  { %v172_v49 = vadd.f32 -0.4999988, %v171_v44  ;;  %v179_v50 = vadd.f32 -0.16666654, %v178_v45  ;;  %v3307_v44 = vperm.slane %v824_v30, 1  ;;  %v285_v45 = vadd.s32 %v284_v26, %v274_v31  ;;  %4600 = vst [vmem:[#allocation12_spill] sm:$0xff] %v3331_v63 }
  0x86   :  { %v173_v52 = vmul.f32 %v172_v49, %v168_v11  ;;  %v180_v59 = vmul.f32 %v179_v50, %v168_v11  ;;  %v254_v11 = vshrl.u32 %v3249_v2, 16  ;;  %v233_v2 = vsel %vm227_vm0, %v230_v61, %v232_v33  ;;  %4598 = vst [vmem:[#allocation10_spill] sm:$0xff] %v3307_v44 }
  0x87   :  { %v3213_v39 = vpop.permute.xlu1 %819  ;;  %v286_v22 = vadd.s32 %v285_v45, %v276_v24  ;;  %v287_v57 = vmul.u32 %v3233_v51, %v233_v2  ;;  %v944_v61 = vperm.slane %v3085_v10, 3  ;;  %v3334_v33 = vperm.slane %v885_v48, 2 }
  0x88   :  { %4593 = vst [vmem:[#allocation7_spill] sm:$0xff] %v3213_v39  ;;  %v174_v1 = vadd.f32 1.0, %v173_v52  ;;  %v181_v56 = vadd.f32 1.0, %v180_v59  ;;  %v3301_v34 = vadd.s32 %v263_v12, %v254_v11  ;;  %v848_v11 = vmul.f32 %v3307_v44, %v3213_v39 }
  0x89   :  { %v290_v51 = vadd.s32 1, %v286_v22 }
  0x8a   :  { %v182_v8 = vmul.f32 %v181_v56, %v166_v21  ;;  %v190_v9 = vxor.u32 2147483648, %v174_v1  ;;  %v825_v21 = vperm.slane %v3085_v10, 5  ;;  %vm289_vm14 = vc.u32 %v3301_v34, %v3303_v35 }
  0x8b   :  { %v291_v12 = vsel %vm289_vm14, %v290_v51, %v286_v22 }
  0x8c   :  { %v187_v14 = vxor.u32 2147483648, %v182_v8  ;;  %v191_v16 = vsel %vm189_vm9, %v190_v9, %v182_v8  ;;  %v500_v17 = vsel %vm498_vm11, %v190_v9, %v182_v8  ;;  %v3318_v42 = vperm.slane %v825_v21, 1 }
  0x8d   :  { %vm337_vm9 = vweird.f32 %v3170_v43 }
  0x8e   :  { %v188_v53 = vsel %vm186_vm8, %v174_v1, %v187_v14  ;;  %v497_v15 = vsel %vm495_vm13, %v174_v1, %v187_v14  ;;  %v945_v1 = vperm.slane %v3085_v10, 7  ;;  %v849_v13 = vmul.f32 %v3318_v42, %v3213_v39 }
  0x8f   :  { %v192_v36 = vsel %vm185_vm7, %v188_v53, %v191_v16  ;;  %v501_v37 = vsel %vm494_vm10, %v497_v15, %v500_v17  ;;  %v292_v14 = vadd.s32 %v291_v12, %v287_v57  ;;  %v3355_v17 = vperm.slane %v944_v61, 3 }
  0x90   :  { %v3251_v6 = vpop.permute.xlu1 %715  ;;  %v193_v5 = vsel %vm183_vm6, nan, %v192_v36  ;;  %v502_v40 = vsel %vm183_vm6, nan, %v501_v37  ;;  %v3357_v18 = vperm.slane %v945_v1, 3  ;;  %v3367_v1 = vpop.permute.xlu0 %670  ;;  %vm1024_vm10 = vcmask 261120  }
  0x91   :  { %v680_v41 = vperm.slane %v193_v5, 0  ;;  %v762_v49 = vperm.slane %v502_v40, 0  ;;  %v681_v50 = vperm.slane %v193_v5, 4  ;;  %v763_v47 = vperm.slane %v502_v40, 4  ;;  %4602 = vst [vmem:[#allocation14_spill] sm:$0xff] %v3367_v1 }
  0x92   :  { %v293_v26 = vadd.s32 536870912, %v292_v14 }
  0x93   :  { %v3323_v58 = vperm.slane %v680_v41, 0  ;;  %v3325_v52 = vperm.slane %v762_v49, 0  ;;  %v3327_v59 = vperm.slane %v681_v50, 0  ;;  %v3329_v60 = vperm.slane %v763_v47, 0  ;;  %v3365_v41 = vpop.permute.xlu2 %749 }
  0x94   :  { %v294_v45 = vshrl.u32 %v293_v26, 30 }
  0x95   :  { %v704_v56 = vmul.f32 %v3323_v58, %v3316_v54  ;;  %v786_v4 = vmul.f32 %v3325_v52, %v3180_v62  ;;  %v705_v8 = vmul.f32 %v3327_v59, %v3316_v54  ;;  %v787_v9 = vmul.f32 %v3329_v60, %v3180_v62 }
  0x96   :  { %v295_v48 = vshll.u32 %v294_v45, 30 }
  0x97   :  { %v740_v10 = vadd.f32 %v3176_v55, %v704_v56  ;;  %v741_v31 = vadd.f32 %v3176_v55, %v705_v8 }
  0x98   :  { %v296_v47 = vsub.s32 %v292_v14, %v295_v48 }
  0x99   :  { %v3270_v20 = vpop.permute.xlu1 %881  ;;  %v802_v21 = vadd.f32 %v786_v4, %v740_v10  ;;  %v803_v2 = vadd.f32 %v787_v9, %v741_v31  ;;  %v288_v9 = vadd.s32 %v3303_v35, %v3301_v34 }
  0x9a   :  { %4596 = vst [vmem:[#allocation8_spill] sm:$0xff] %v3270_v20  ;;  %v908_v16 = vmul.f32 %v3313_v46, %v3270_v20  ;;  %v909_v24 = vmul.f32 %v3334_v33, %v3270_v20  ;;  %vm297_vm15 = vcmp.lt.s32.totalorder %v296_v47, 0  ;;  %v298_v22 = vsub.s32 0, %v296_v47 }
  0x9b   :  { %v864_v15 = vadd.f32 %v848_v11, %v802_v21  ;;  %v865_v36 = vadd.f32 %v849_v13, %v803_v2  ;;  %v3369_v8 = vpop.permute.xlu2 %710  ;;  %v3373_v2 = vpop.permute.xlu0 %753 }
  0x9c   :  { %v299_v57 = vsel %vm297_vm15, %v298_v22, %v296_v47  ;;  %4603 = vst [vmem:[#allocation15_spill] sm:$0xff] %v3373_v2 }
  0x9d   :  { %v924_v5 = vadd.f32 %v908_v16, %v864_v15  ;;  %v925_v40 = vadd.f32 %v909_v24, %v865_v36  ;;  %v300_v61 = vclz %v299_v57  ;;  %v318_v15 = vsub.s32 4, %v294_v45 }
  0x9f   :  { %v2672_v51 = vadd.s32 4294967294, %v300_v61  ;;  %v319_v35 = vsel %vm196_vm1, %v318_v15, %v294_v45  ;;  %v886_v61 = vperm.slane %v3170_v43, 2  ;;  %v3415_v15 = vmul.f32 %v3327_v59, %v3264_v28 }
  0xa1   :  { %vm2673_vm0 = vcmp.lt.s32.totalorder %v2672_v51, 0 }
  0xa2   :  { %v3294_v19 = vpop.permute.xlu1 %745  ;;  %v303_v11 = vsel %vm2673_vm0, 0, %v2672_v51 }
  0xa3   :  { %v304_v12 = vsub.s32 32, %v303_v11  ;;  %v305_v10 = vshll.u32 %v296_v47, %v303_v11  ;;  %v308_v31 = vsub.s32 4294967266, %v303_v11  ;;  %v3375_v24 = vpop.permute.xlu2 %811  ;;  %v3382_v47 = vpop.permute.xlu0 %815 }
  0xa4   :  { %4604 = vst [vmem:[#allocation16_spill] sm:$0xff] %v3382_v47  ;;  %v844_v3 = vmul.f32 %v3307_v44, %v3382_v47 }
  0xa5   :  { %v306_v13 = vshrl.u32 %v288_v9, %v304_v12  ;;  %v309_v14 = vadd.s32 127, %v308_v31  ;;  %v3393_v12 = vperm.slane %v886_v61, 2  ;;  %v700_v31 = vmul.f32 %v3323_v58, %v3367_v1 }
  0xa7   :  { %v307_v16 = vor.u32 %v306_v13, %v305_v10  ;;  %v310_v21 = vshll.u32 %v309_v14, 23  ;;  %v946_v10 = vperm.slane %v3170_v43, 3  ;;  %v701_v13 = vmul.f32 %v3327_v59, %v3367_v1 }
  0xa9   :  { %v311_v26 = vor.u32 4788187, %v310_v21 }
  0xab   :  { %v3347_v30 = vpop.permute.xlu1 %941  ;;  %v312_v36 = vand.u32 2147483647, %v311_v26  ;;  %v3384_v22 = vpop.permute.xlu2 %807  ;;  %v827_v26 = vperm.slane %v3170_v43, 5 }
  0xac   :  { %4601 = vst [vmem:[#allocation13_spill] sm:$0xff] %v3347_v30  ;;  %v968_v53 = vmul.f32 %v3355_v17, %v3347_v30  ;;  %v969_v37 = vmul.f32 %v3357_v18, %v3347_v30  ;;  %v3432_v61 = vpop.permute.xlu0 %877 }
  0xad   :  { %4605 = vst [vmem:[#allocation17_spill] sm:$0xff] %v3432_v61  ;;  %v904_v23 = vmul.f32 %v3313_v46, %v3432_v61 }
  0xae   :  { %v984_v49 = vadd.f32 %v968_v53, %v924_v5  ;;  %v985_v50 = vadd.f32 %v969_v37, %v925_v40  ;;  %v314_v53 = vcvt.s32.f32 %v307_v16  ;;  %v321_v5 = vsel %vm195_vm2, 0, %v319_v35 }
  0xaf   :  { %v647_v48 = vadd.s32 3, %v321_v5  ;;  %v3421_v35 = vmul.f32 %v3393_v12, %v3270_v20 }
  0xb0   :  { %2797 = vtanh.f32 %v984_v49  ;;  %v315_v34 = vmul.f32 %v314_v53, %v312_v36  ;;  %v3411_v53 = vmul.f32 %v3323_v58, %v3264_v28 }
  0xb1   :  { %2799 = vtanh.f32 %v985_v50  ;;  %v826_v50 = vperm.slane %v3170_v43, 1  ;;  %v3389_v0 = vand.u32 3, %v647_v48  ;;  %v737_v48 = vadd.f32 %v3287_v7, %v701_v13 }
  0xb2   :  { %v316_v37 = vxor.u32 2147483648, %v315_v34 }
  0xb3   :  { %vm653_vm4 = vcmp.eq.s32.totalorder %v3389_v0, 2  ;;  %vm650_vm6 = vcmp.eq.s32.totalorder %v3389_v0, 0  ;;  %vm649_vm8 = vcmp.lt.s32.totalorder %v3389_v0, 2 }
  0xb4   :  { %v317_v40 = vsel %vm196_vm1, %v316_v37, %v315_v34  ;;  %v3423_v37 = vperm.slane %v946_v10, 3  ;;  %v782_v10 = vmul.f32 %v3325_v52, %v3373_v2 }
  0xb5   :  { %v320_v49 = vsel %vm195_vm2, %v3170_v43, %v317_v40  ;;  %v736_v40 = vadd.f32 %v3287_v7, %v700_v31 }
  0xb6   :  { %v2798_v56 = vpop.eup %2797  ;;  %v322_v57 = vmul.f32 %v320_v49, %v320_v49 }
  0xb7   :  { %v2800_v4 = vpop.eup %2799  ;;  %1049 = vmatpush.msra.mxu0 %v2798_v56  ;;  %v3387_v56 = vand.u32 3, %v321_v5  ;;  %v3426_v5 = vperm.slane %v827_v26, 1  ;;  %v887_v26 = vperm.slane %v3170_v43, 6 }
  0xb8   :  { %1078 = vmatpush.msra.mxu1 %v2800_v4  ;;  %v323_v51 = vmul.f32 -0.001358992, %v322_v57  ;;  %v330_v45 = vmul.f32 -0.00019511016, %v322_v57  ;;  %v3391_v4 = vperm.slane %v826_v50, 1  ;;  %v692_v50 = vmul.f32 %v3323_v58, %v3331_v63 }
  0xb9   :  { %vm343_vm3 = vcmp.eq.s32.totalorder %v3387_v56, 2  ;;  %vm340_vm5 = vcmp.eq.s32.totalorder %v3387_v56, 0  ;;  %vm339_vm7 = vcmp.lt.s32.totalorder %v3387_v56, 2  ;;  %v3444_v31 = vmul.f32 %v3426_v5, %v3213_v39 }
  0xba   :  { %v324_v9 = vadd.f32 0.041655596, %v323_v51  ;;  %v331_v11 = vadd.f32 0.008332121, %v330_v45  ;;  %v3406_v21 = vmul.f32 %v3391_v4, %v3213_v39  ;;  %v3434_v51 = vpop.permute.xlu2 %937  ;;  %v783_v58 = vmul.f32 %v3329_v60, %v3373_v2 }
  0xbb   :  { %4606 = vst [vmem:[#allocation18_spill] sm:$0xff] %v3434_v51  ;;  %v3449_v13 = vadd.f32 %v3369_v8, %v692_v50  ;;  %v964_v50 = vmul.f32 %v3355_v17, %v3434_v51 }
  0xbc   :  { %v325_v14 = vmul.f32 %v324_v9, %v322_v57  ;;  %v332_v16 = vmul.f32 %v331_v11, %v322_v57  ;;  %v3438_v11 = vmul.f32 %v3423_v37, %v3347_v30  ;;  %v799_v38 = vadd.f32 %v783_v58, %v737_v48 }
  0xbd   :  { %4607 = vst [vmem:[#allocation19_spill] sm:$0xff] %v3449_v13 }
  0xbe   :  { %v326_v36 = vadd.f32 -0.4999988, %v325_v14  ;;  %v333_v34 = vadd.f32 -0.16666654, %v332_v16 }
  0xc0   :  { %v327_v45 = vmul.f32 %v326_v36, %v322_v57  ;;  %v334_v9 = vmul.f32 %v333_v34, %v322_v57  ;;  %v3453_v57 = vmul.f32 %v3327_v59, %v3331_v63  ;;  %v947_v36 = vperm.slane %v3170_v43, 7 }
  0xc1   :  { %v798_v34 = vadd.f32 %v782_v10, %v736_v40  ;;  %v3463_v59 = vperm.slane %v887_v26, 2  ;;  %v845_v40 = vmul.f32 %v3318_v42, %v3382_v47  ;;  %v905_v10 = vmul.f32 %v3334_v33, %v3432_v61 }
  0xc2   :  { %v328_v14 = vadd.f32 1.0, %v327_v45  ;;  %v335_v16 = vadd.f32 1.0, %v334_v9  ;;  %v3465_v45 = vperm.slane %v947_v36, 3  ;;  %v3467_v9 = vpop.permute.xlu1 %873  ;;  %v965_v26 = vmul.f32 %v3357_v18, %v3434_v51 }
  0xc3   :  { %v860_v25 = vadd.f32 %v844_v3, %v798_v34  ;;  %v861_v58 = vadd.f32 %v845_v40, %v799_v38 }
  0xc4   :  { %v336_v27 = vmul.f32 %v335_v16, %v320_v49  ;;  %v344_v32 = vxor.u32 2147483648, %v328_v14  ;;  %v3479_v16 = vmul.f32 %v3463_v59, %v3270_v20  ;;  %v3483_v3 = vmul.f32 %v3465_v45, %v3347_v30 }
  0xc5   :  { %v920_v48 = vadd.f32 %v904_v23, %v860_v25  ;;  %v921_v40 = vadd.f32 %v905_v10, %v861_v58  ;;  %v847_v20 = vmul.f32 %v3426_v5, %v3382_v47  ;;  %v907_v10 = vmul.f32 %v3463_v59, %v3432_v61 }
  0xc6   :  { %v341_v29 = vxor.u32 2147483648, %v336_v27  ;;  %v345_v39 = vsel %vm343_vm3, %v344_v32, %v336_v27  ;;  %v655_v49 = vsel %vm653_vm4, %v344_v32, %v336_v27  ;;  %v846_v27 = vmul.f32 %v3391_v4, %v3382_v47 }
  0xc7   :  { %v3495_v32 = vmul.f32 %v3393_v12, %v3432_v61  ;;  %v980_v38 = vadd.f32 %v964_v50, %v920_v48  ;;  %v981_v50 = vadd.f32 %v965_v26, %v921_v40  ;;  %v967_v43 = vmul.f32 %v3465_v45, %v3434_v51 }
  0xc8   :  { %v342_v36 = vsel %vm340_vm5, %v328_v14, %v341_v29  ;;  %v652_v34 = vsel %vm650_vm6, %v328_v14, %v341_v29  ;;  %v3507_v14 = vmul.f32 %v3423_v37, %v3434_v51  ;;  %v778_v26 = vmul.f32 %v3325_v52, %v3365_v41 }
  0xc9   :  { %v346_v23 = vsel %vm339_vm7, %v342_v36, %v345_v39  ;;  %v656_v25 = vsel %vm649_vm8, %v652_v34, %v655_v49  ;;  %2801 = vtanh.f32 %v980_v38  ;;  %v900_v47 = vmul.f32 %v3313_v46, %v3467_v9 }
  0xca   :  { %v347_v30 = vsel %vm337_vm9, nan, %v346_v23  ;;  %v657_v29 = vsel %vm337_vm9, nan, %v656_v25  ;;  %2803 = vtanh.f32 %v981_v50  ;;  %v840_v23 = vmul.f32 %v3307_v44, %v3375_v24 }
  0xcb   :  { %v682_v56 = vperm.slane %v347_v30, 0  ;;  %v764_v39 = vperm.slane %v657_v29, 0  ;;  %v683_v36 = vperm.slane %v347_v30, 4  ;;  %v765_v0 = vperm.slane %v657_v29, 4 }
  0xcc   :  { %v732_v30 = vadd.f32 %v3251_v6, %v3411_v53 }
  0xcd   :  { %v3515_v49 = vperm.slane %v682_v56, 0  ;;  %v3517_v48 = vperm.slane %v764_v39, 0  ;;  %v3519_v58 = vperm.slane %v683_v36, 0  ;;  %v3521_v34 = vperm.slane %v765_v0, 0  ;;  %v3537_v56 = vpop.permute.xlu1 %933 }
  0xce   :  { %4608 = vst [vmem:[#allocation20_spill] sm:$0xff] %v3537_v56  ;;  %v794_v61 = vadd.f32 %v778_v26, %v732_v30  ;;  %v960_v13 = vmul.f32 %v3355_v17, %v3537_v56  ;;  %v779_v30 = vmul.f32 %v3329_v60, %v3365_v41 }
  0xcf   :  { %v706_v25 = vmul.f32 %v3515_v49, %v3316_v54  ;;  %v788_v38 = vmul.f32 %v3517_v48, %v3180_v62  ;;  %v707_v40 = vmul.f32 %v3519_v58, %v3316_v54  ;;  %v789_v29 = vmul.f32 %v3521_v34, %v3180_v62  ;;  %v2802_v62 = vpop.eup %2801 }
  0xd0   :  { %v702_v53 = vmul.f32 %v3515_v49, %v3367_v1  ;;  %v784_v39 = vmul.f32 %v3517_v48, %v3373_v2  ;;  %v703_v36 = vmul.f32 %v3519_v58, %v3367_v1  ;;  %v785_v0 = vmul.f32 %v3521_v34, %v3373_v2  ;;  %1050 = vmatpush.msra.mxu0 %v2802_v62  ;;  %v2804_v26 = vpop.eup %2803 }
  0xd1   :  { %v742_v50 = vadd.f32 %v3176_v55, %v706_v25  ;;  %v743_v51 = vadd.f32 %v3176_v55, %v707_v40  ;;  %v733_v1 = vadd.f32 %v3251_v6, %v3415_v15  ;;  %v856_v25 = vadd.f32 %v840_v23, %v794_v61  ;;  %1079 = vmatpush.msra.mxu1 %v2804_v26 }
  0xd2   :  { %v738_v54 = vadd.f32 %v3287_v7, %v702_v53  ;;  %v739_v63 = vadd.f32 %v3287_v7, %v703_v36  ;;  %v841_v53 = vmul.f32 %v3318_v42, %v3375_v24  ;;  %v901_v36 = vmul.f32 %v3334_v33, %v3467_v9 }
  0xd3   :  { %v804_v2 = vadd.f32 %v788_v38, %v742_v50  ;;  %v805_v44 = vadd.f32 %v789_v29, %v743_v51  ;;  %v916_v51 = vadd.f32 %v900_v47, %v856_v25  ;;  %v795_v62 = vadd.f32 %v779_v30, %v733_v1  ;;  %v3596_v30 = vpop.permute.xlu2 %929 }
  0xd4   :  { %v800_v40 = vadd.f32 %v784_v39, %v738_v54  ;;  %v801_v55 = vadd.f32 %v785_v0, %v739_v63  ;;  %v961_v38 = vmul.f32 %v3357_v18, %v3537_v56  ;;  %v698_v54 = vmul.f32 %v3515_v49, %v3264_v28 }
  0xd5   :  { %v866_v7 = vadd.f32 %v3406_v21, %v804_v2  ;;  %v867_v15 = vadd.f32 %v3444_v31, %v805_v44  ;;  %v976_v39 = vadd.f32 %v960_v13, %v916_v51  ;;  %v857_v0 = vadd.f32 %v841_v53, %v795_v62  ;;  %v4609_v51 = vld [vmem:[#allocation10_spill] sm:$0xff] }
  0xd6   :  { %v862_v61 = vadd.f32 %v846_v27, %v800_v40  ;;  %v863_v23 = vadd.f32 %v847_v20, %v801_v55  ;;  %v734_v47 = vadd.f32 %v3251_v6, %v698_v54  ;;  %v780_v55 = vmul.f32 %v3517_v48, %v3365_v41 }
  0xd7   :  { %v926_v63 = vadd.f32 %v3421_v35, %v866_v7  ;;  %v927_v29 = vadd.f32 %v3479_v16, %v867_v15  ;;  %2805 = vtanh.f32 %v976_v39  ;;  %v917_v21 = vadd.f32 %v901_v36, %v857_v0 }
  0xd8   :  { %v922_v2 = vadd.f32 %v3495_v32, %v862_v61  ;;  %v923_v44 = vadd.f32 %v907_v10, %v863_v23  ;;  %v796_v31 = vadd.f32 %v780_v55, %v734_v47  ;;  %v842_v13 = vmul.f32 %v3391_v4, %v3375_v24 }
  0xd9   :  { %v986_v20 = vadd.f32 %v3438_v11, %v926_v63  ;;  %v987_v1 = vadd.f32 %v3483_v3, %v927_v29  ;;  %v977_v16 = vadd.f32 %v961_v38, %v917_v21  ;;  %v902_v27 = vmul.f32 %v3393_v12, %v3467_v9  ;;  %v3584_v11 = vpop.permute.xlu0 %869  ;;  %v4610_v38 = vld [vmem:[#allocation19_spill] sm:$0xff] }
  0xda   :  { %v982_v7 = vadd.f32 %v3507_v14, %v922_v2  ;;  %v983_v35 = vadd.f32 %v967_v43, %v923_v44  ;;  %v962_v32 = vmul.f32 %v3423_v37, %v3537_v56  ;;  %v858_v3 = vadd.f32 %v842_v13, %v796_v31  ;;  %v4611_v2 = vld [vmem:[#allocation12_spill] sm:$0xff] }
  0xdb   :  { %2807 = vtanh.f32 %v986_v20  ;;  %v699_v14 = vmul.f32 %v3519_v58, %v3264_v28  ;;  %v781_v10 = vmul.f32 %v3521_v34, %v3365_v41  ;;  %v843_v43 = vmul.f32 %v3426_v5, %v3375_v24  ;;  %v30_v44 = vld [vmem:[%s4531_s0 + $0x98] sm:$0xff] }
  0xdc   :  { %2809 = vtanh.f32 %v987_v1  ;;  %v903_v50 = vmul.f32 %v3463_v59, %v3467_v9  ;;  %v729_v25 = vadd.f32 %v3369_v8, %v3453_v57  ;;  %v918_v26 = vadd.f32 %v902_v27, %v858_v3  ;;  %1016 = vperm.xlu1 %2795, %v30_v44   ;;  %v23_v44 = vld [vmem:[%s4531_s0 + $0x18] sm:$0xff] }
  0xdd   :  { %2811 = vtanh.f32 %v982_v7  ;;  %v735_v40 = vadd.f32 %v3251_v6, %v699_v14  ;;  %v774_v53 = vmul.f32 %v3325_v52, %v3294_v19  ;;  %v2806_v36 = vpop.eup %2805  ;;  %v963_v15 = vmul.f32 %v3465_v45, %v3537_v56 }
  0xde   :  { %2813 = vtanh.f32 %v983_v35  ;;  %v836_v62 = vmul.f32 %v4609_v51, %v3384_v22  ;;  %v896_v57 = vmul.f32 %v3313_v46, %v3584_v11  ;;  %1051 = vmatpush.msra.mxu0 %v2806_v36  ;;  %v978_v61 = vadd.f32 %v962_v32, %v918_v26  ;;  %v20_v51 = vld [vmem:[%s4531_s0] sm:$0xff] }
  0xdf   :  { %2815 = vtanh.f32 %v977_v16  ;;  %v797_v23 = vadd.f32 %v781_v10, %v735_v40  ;;  %v790_v54 = vadd.f32 %v774_v53, %v4610_v38  ;;  %v775_v63 = vmul.f32 %v3329_v60, %v3294_v19  ;;  %v28_v40 = vld [vmem:[%s4531_s0 + $0x88] sm:$0xff] }
  0xe0   :  { %v956_v29 = vmul.f32 %v3355_v17, %v3596_v30  ;;  %v837_v39 = vmul.f32 %v3318_v42, %v3384_v22  ;;  %v897_v0 = vmul.f32 %v3334_v33, %v3584_v11  ;;  %v694_v46 = vmul.f32 %v3515_v49, %v4611_v2 }
  0xe1   :  { %v2808_v52 = vpop.eup %2807  ;;  %2817 = vtanh.f32 %v978_v61  ;;  %v859_v60 = vadd.f32 %v843_v43, %v797_v23  ;;  %v852_v55 = vadd.f32 %v836_v62, %v790_v54  ;;  %v791_v20 = vadd.f32 %v775_v63, %v729_v25  ;;  %v33_v61 = vld [vmem:[%s4531_s0 + $0xb0] sm:$0xff]  ;;  %v21_v54 = vld [vmem:[%s4531_s0 + $0x8] sm:$0xff] }
  0xe2   :  { %v2810_v47 = vpop.eup %2809  ;;  %1107 = vmatpush.msra.mxu2 %v2808_v52  ;;  %v730_v42 = vadd.f32 %v3369_v8, %v694_v46  ;;  %v776_v33 = vmul.f32 %v3517_v48, %v3294_v19  ;;  %v838_v49 = vmul.f32 %v3391_v4, %v3384_v22  ;;  %v957_v31 = vmul.f32 %v3357_v18, %v3596_v30  ;;  %v29_v23 = vld [vmem:[%s4531_s0 + $0x90] sm:$0xff]  ;;  %v34_v52 = vld [vmem:[%s4531_s0 + $0xb8] sm:$0xff]  ;;  %v32_v46 = vld [vmem:[%s4531_s0 + $0xa8] sm:$0xff] }
  0xe3   :  { %v2812_v17 = vpop.eup %2811  ;;  %1136 = vmatpush.msra.mxu3 %v2810_v47  ;;  %v919_v21 = vadd.f32 %v903_v50, %v859_v60  ;;  %v912_v7 = vadd.f32 %v896_v57, %v852_v55  ;;  %v853_v35 = vadd.f32 %v837_v39, %v791_v20  ;;  %v898_v27 = vmul.f32 %v3393_v12, %v3584_v11  ;;  %v22_v39 = vld [vmem:[%s4531_s0 + $0x10] sm:$0xff]  ;;  %v3704_v20 = vld [vmem:[%s4532_s1 + $0x18] sm:$0xff] }
  0xe4   :  { %v2814_v1 = vpop.eup %2813  ;;  %1108 = vmatpush.msra.mxu2 %v2812_v17  ;;  %v792_v16 = vadd.f32 %v776_v33, %v730_v42  ;;  %v695_v48 = vmul.f32 %v3519_v58, %v4611_v2  ;;  %v777_v4 = vmul.f32 %v3521_v34, %v3294_v19  ;;  %v958_v18 = vmul.f32 %v3423_v37, %v3596_v30  ;;  %v3698_v47 = vld [vmem:[%s4532_s1 + $0x10] sm:$0xff]  ;;  %s2659_s1 = sshll.u32 %s4533_s2, 4  ;;  %s2660_s1 = int_to_ptr.hbm [resolvable:$true] %s2659_s1 }
  0xe5   :  { %v2816_v13 = vpop.eup %2815  ;;  %1137 = vmatpush.msra.mxu3 %v2814_v1  ;;  %v979_v32 = vadd.f32 %v963_v15, %v919_v21  ;;  %v972_v3 = vadd.f32 %v956_v29, %v912_v7  ;;  %v913_v14 = vadd.f32 %v897_v0, %v853_v35  ;;  %v839_v50 = vmul.f32 %v3426_v5, %v3384_v22  ;;  %v35_v29 = vld [vmem:[%s4531_s0 + $0xc0] sm:$0xff]  ;;  %v37_v0 = vld [vmem:[%s4531_s0 + $0xc8] sm:$0xf] }
  0xe6   :  { %1080 = vmatpush.msra.mxu1 %v2816_v13  ;;  %v854_v10 = vadd.f32 %v838_v49, %v792_v16  ;;  %v731_v43 = vadd.f32 %v3369_v8, %v695_v48  ;;  %v899_v26 = vmul.f32 %v3463_v59, %v3584_v11  ;;  %1006 = vperm.xlu1 %2795, %v28_v40   ;;  %v1439_v60 = vand.u32 2139095040, %v3698_v47 }
  0xe7   :  { %v2818_v12 = vpop.eup %2817  ;;  %2819 = vtanh.f32 %v979_v32  ;;  %v973_v25 = vadd.f32 %v957_v31, %v913_v14  ;;  %v959_v5 = vmul.f32 %v3465_v45, %v3596_v30  ;;  %v31_v45 = vld [vmem:[%s4531_s0 + $0xa0] sm:$0xff]  ;;  %1011 = vperm.xlu2 %2796, %v29_v23   ;;  %v1593_v42 = vand.u32 2139095040, %v3704_v20 }
  0xe8   :  { %1109 = vmatpush.msra.mxu2 %v2818_v12  ;;  %2821 = vtanh.f32 %v972_v3  ;;  %v914_v58 = vadd.f32 %v898_v27, %v854_v10  ;;  %v793_v34 = vadd.f32 %v777_v4, %v731_v43  ;;  %1021 = vperm.xlu0 %2794, %v31_v45   ;;  %v1440_v55 = vshrl.u32 %v1439_v60, 23 }
  0xe9   :  { %2823 = vtanh.f32 %v973_v25  ;;  %v1594_v49 = vshrl.u32 %v1593_v42, 23  ;;  %v4576_v16 = vand.u32 2147483647, %v3698_v47  ;;  %v4612_v27 = vmov 920167782  }
  0xea   :  { %v974_v37 = vadd.f32 %v958_v18, %v914_v58  ;;  %v855_v53 = vadd.f32 %v839_v50, %v793_v34  ;;  %v2716_v17 = vadd.s32 4294967169, %v1440_v55  ;;  %v4613_v4 = vmov 1326507024  }
  0xeb   :  { %v2719_v1 = vadd.s32 4294967169, %v1594_v49  ;;  %v4614_v10 = vmov 2475754826   ;;  %v4615_v43 = vmov 2131351028  }
  0xec   :  { %2825 = vtanh.f32 %v974_v37  ;;  %v915_v36 = vadd.f32 %v899_v26, %v855_v53  ;;  %v1446_v33 = vadd.s32 1, %v2716_v17  ;;  %v4616_v25 = vmov 2102212464  }
  0xed   :  { %v2820_v15 = vpop.eup %2819  ;;  %v1600_v7 = vadd.s32 1, %v2719_v1  ;;  %v1443_v40 = vand.u32 8388607, %v4576_v16 }
  0xee   :  { %v2822_v59 = vpop.eup %2821  ;;  %1138 = vmatpush.msra.mxu3 %v2820_v15  ;;  %v975_v62 = vadd.f32 %v959_v5, %v915_v36  ;;  %1176 = vperm.xlu1 %2795, %v33_v61   ;;  %vm1447_vm11 = vcmp.gt.s32.totalorder %v1446_v33, 0  ;;  %v4617_v5 = vmov 683565275  }
  0xef   :  { %v2824_v57 = vpop.eup %2823  ;;  %1052 = vmatpush.msra.mxu0 %v2822_v59  ;;  %1186 = vperm.xlu2 %2796, %v35_v29   ;;  %v1448_v21 = vsel %vm1447_vm11, %v1446_v33, 0  ;;  %vm1601_vm12 = vcmp.gt.s32.totalorder %v1600_v7, 0  ;;  %v1444_v45 = vor.u32 8388608, %v1443_v40 }
  0xf0   :  { %1081 = vmatpush.msra.mxu1 %v2824_v57  ;;  %2827 = vtanh.f32 %v975_v62  ;;  %2680 = vmatmul.msk.f32.vlgmr.msra.gmra.mxu0 %vm1024_vm10, %v20_v51  ;;  %v1450_v35 = vand.u32 31, %v1448_v21  ;;  %v1602_v13 = vsel %vm1601_vm12, %v1600_v7, 0  ;;  %v3713_v3 = vshrl.u32 %v1448_v21, 5 }
  0xf1   :  { %2684 = vmatmul.msk.f32.vlgmr.msra.gmra.mxu1 %vm1024_vm10, %v20_v51  ;;  %1181 = vperm.xlu0 %2794, %v34_v52   ;;  %v1604_v14 = vand.u32 31, %v1602_v13  ;;  %v4575_v57 = vand.u32 2147483647, %v3704_v20  ;;  %v3742_v23 = vshrl.u32 %v1602_v13, 5  ;;  %v3769_v49 = vshll.u32 %v1444_v45, 8 }
  0xf2   :  { %v2826_v38 = vpop.eup %2825  ;;  %v3707_v31 = vsub.s32 32, %v1450_v35  ;;  %v1465_v48 = vshll.u32 %v4612_v27, %v1450_v35  ;;  %v1456_v18 = vshll.u32 %v4614_v10, %v1450_v35  ;;  %v1459_v50 = vshll.u32 %v4615_v43, %v1450_v35 }
  0xf3   :  { %1110 = vmatpush.msra.mxu2 %v2826_v38  ;;  %v1462_v34 = vshll.u32 %v4616_v25, %v1450_v35  ;;  %vm1471_vm13 = vcmp.lt.s32.totalorder %v3713_v3, 4  ;;  %v3727_v53 = vsub.s32 32, %v1604_v14  ;;  %v1453_v36 = vshll.u32 %v4617_v5, %v1450_v35 }
  0xf4   :  { %2688 = vmatmul.msk.f32.vlgmr.msra.gmra.mxu2 %vm1024_vm10, %v20_v51  ;;  %v1466_v32 = vshrl.u32 %v4613_v4, %v3707_v31  ;;  %v1457_v12 = vshrl.u32 %v4615_v43, %v3707_v31  ;;  %v1460_v58 = vshrl.u32 %v4616_v25, %v3707_v31  ;;  %v1463_v26 = vshrl.u32 %v4612_v27, %v3707_v31 }
  0xf5   :  { %v1454_v15 = vshrl.u32 %v4614_v10, %v3707_v31  ;;  %vm1468_vm14 = vcmp.lt.s32.totalorder %v3713_v3, 1  ;;  %vm1470_vm15 = vcmp.lt.s32.totalorder %v3713_v3, 3  ;;  %vm1469_vm0 = vcmp.lt.s32.totalorder %v3713_v3, 2 }
  0xf6   :  { %v2828_v63 = vpop.eup %2827  ;;  %v1467_v37 = vor.u32 %v1466_v32, %v1465_v48  ;;  %v3734_v59 = vor.u32 %v1460_v58, %v1459_v50  ;;  %v1464_v62 = vor.u32 %v1463_v26, %v1462_v34  ;;  %v1616_v38 = vshll.u32 %v4616_v25, %v1604_v14 }
  0xf7   :  { %1139 = vmatpush.msra.mxu3 %v2828_v63  ;;  %1171 = vperm.xlu2 %2796, %v32_v46   ;;  %v3747_v63 = vor.u32 %v1454_v15, %v1453_v36  ;;  %v1607_v52 = vshll.u32 %v4617_v5, %v1604_v14  ;;  %v1619_v29 = vshll.u32 %v4612_v27, %v1604_v14  ;;  %v1597_v1 = vand.u32 8388607, %v4575_v57 }
  0xf8   :  { %2692 = vmatmul.msk.f32.vlgmr.msra.gmra.mxu3 %vm1024_vm10, %v20_v51  ;;  %2681 = vmatmul.msk.f32.gmra.mxu0 %vm1024_vm10, %v21_v54  ;;  %v3732_v51 = vor.u32 %v1457_v12, %v1456_v18  ;;  %v1481_v61 = vsel %vm1471_vm13, %v1467_v37, 1326507024  ;;  %v1608_v60 = vshrl.u32 %v4614_v10, %v3727_v53  ;;  %v1610_v55 = vshll.u32 %v4614_v10, %v1604_v14 }
  0xf9   :  { %2685 = vmatmul.msk.f32.gmra.mxu1 %vm1024_vm10, %v21_v54  ;;  %1335 = vperm.xlu0 %2794, %v37_v0   ;;  %v1477_v0 = vsel %vm1471_vm13, %v1464_v62, 920167782  ;;  %v1611_v17 = vshrl.u32 %v4615_v43, %v3727_v53  ;;  %v1613_v42 = vshll.u32 %v4615_v43, %v1604_v14  ;;  %v1614_v33 = vshrl.u32 %v4616_v25, %v3727_v53 }
  0xfa   :  { %v1480_v46 = vsel %vm1468_vm14, %v3732_v51, %v3734_v59  ;;  %v1476_v7 = vsel %vm1468_vm14, %v3747_v63, %v3732_v51  ;;  %v1478_v35 = vsel %vm1470_vm15, %v3734_v59, %v1477_v0  ;;  %vm1625_vm1 = vcmp.lt.s32.totalorder %v3742_v23, 4 }
  0xfb   :  { %v3783_v48 = vor.u32 %v1608_v60, %v1607_v52  ;;  %v3787_v32 = vor.u32 %v1614_v33, %v1613_v42  ;;  %v1479_v14 = vsel %vm1469_vm0, %v1476_v7, %v1478_v35  ;;  %vm1622_vm2 = vcmp.lt.s32.totalorder %v3742_v23, 1 }
  0xfc   :  { %2689 = vmatmul.msk.f32.gmra.mxu2 %vm1024_vm10, %v21_v54  ;;  %vm1624_vm3 = vcmp.lt.s32.totalorder %v3742_v23, 3  ;;  %v1485_v18 = vand.u32 65535, %v3769_v49  ;;  %v1598_v50 = vor.u32 8388608, %v1597_v1  ;;  %v1510_v25 = vshrl.u32 %v1479_v14, 16 }
  0xfd   :  { %vm1623_vm4 = vcmp.lt.s32.totalorder %v3742_v23, 2  ;;  %v1486_v26 = vshrl.u32 %v3769_v49, 16 }
 0x100   :  { %2693 = vmatmul.msk.f32.gmra.mxu3 %vm1024_vm10, %v21_v54  ;;  %2682 = vmatmul.msk.f32.gmra.mxu0 %vm1024_vm10, %v22_v39  ;;  %v1617_v54 = vshrl.u32 %v4612_v27, %v3727_v53 }
 0x101   :  { %2686 = vmatmul.msk.f32.gmra.mxu1 %vm1024_vm10, %v22_v39 }
 0x102   :  { %v1618_v21 = vor.u32 %v1617_v54, %v1616_v38  ;;  %v3819_v38 = vmul.u32 %v1510_v25, %v1485_v18 }
 0x104   :  { %2690 = vmatmul.msk.f32.gmra.mxu2 %vm1024_vm10, %v22_v39  ;;  %v1631_v10 = vsel %vm1625_vm1, %v1618_v21, 920167782  ;;  %v1515_v33 = vshll.u32 %v3819_v38, 16 }
 0x105   :  { %v1632_v34 = vsel %vm1624_vm3, %v3787_v32, %v1631_v10 }
 0x108   :  { %2694 = vmatmul.msk.f32.gmra.mxu3 %vm1024_vm10, %v22_v39  ;;  %2683 = vmatmul.msk.f32.gmra.mxu0 %vm1024_vm10, %v23_v44  ;;  %v1620_v39 = vshrl.u32 %v4613_v4, %v3727_v53  ;;  %v3785_v4 = vor.u32 %v1611_v17, %v1610_v55 }
 0x109   :  { %2687 = vmatmul.msk.f32.gmra.mxu1 %vm1024_vm10, %v23_v44 }
 0x10a   :  { %v1621_v13 = vor.u32 %v1620_v39, %v1619_v29  ;;  %v1630_v58 = vsel %vm1622_vm2, %v3783_v48, %v3785_v4  ;;  %v1634_v37 = vsel %vm1622_vm2, %v3785_v4, %v3787_v32 }
 0x10b   :  { %v1633_v45 = vsel %vm1623_vm4, %v1630_v58, %v1632_v34  ;;  %v1514_v34 = vmul.u32 %v1510_v25, %v1486_v26 }
 0x10c   :  { %2691 = vmatmul.msk.f32.gmra.mxu2 %vm1024_vm10, %v23_v44  ;;  %v1635_v12 = vsel %vm1625_vm1, %v1621_v13, 1326507024  ;;  %v1663_v35 = vand.u32 65535, %v1633_v45 }
 0x10d   :  { %v1636_v36 = vsel %vm1624_vm3, %v1618_v21, %v1635_v12  ;;  %v4618_v12 = vmov 0  }
 0x10e   :  { %v1637_v54 = vsel %vm1623_vm4, %v1634_v37, %v1636_v36 }
 0x10f   :  { %v1642_v60 = vshrl.u32 %v1637_v54, 16 }
 0x110   :  { %2695 = vmatmul.msk.f32.gmra.mxu3 %vm1024_vm10, %v23_v44  ;;  %v1482_v44 = vsel %vm1470_vm15, %v1464_v62, %v1481_v61  ;;  %v3815_v62 = vshll.u32 %v1598_v50, 8  ;;  %v1509_v61 = vand.u32 65535, %v1479_v14 }
 0x111   :  { %v1483_v27 = vsel %vm1469_vm0, %v1480_v46, %v1482_v44  ;;  %v1664_v46 = vshrl.u32 %v1633_v45, 16 }
 0x112   :  { %v1488_v43 = vshrl.u32 %v1483_v27, 16  ;;  %v1487_v40 = vand.u32 65535, %v1483_v27  ;;  %v1639_v0 = vand.u32 65535, %v3815_v62  ;;  %v1511_v17 = vmul.u32 %v1509_v61, %v1485_v18 }
 0x113   :  { %v3831_v42 = vmul.u32 %v1509_v61, %v1486_v26  ;;  %v1640_v21 = vshrl.u32 %v3815_v62, 16  ;;  %v1641_v27 = vand.u32 65535, %v1637_v54 }
 0x114   :  { %v3813_v15 = vmul.u32 %v1488_v43, %v1485_v18  ;;  %v3823_v52 = vmul.u32 %v1487_v40, %v1486_v26  ;;  %v1489_v29 = vmul.u32 %v1487_v40, %v1485_v18  ;;  %v3836_v13 = vmul.u32 %v1664_v46, %v1639_v0 }
 0x115   :  { %v3838_v14 = vmul.u32 %v1642_v60, %v1639_v0  ;;  %v4577_v10 = vshll.u32 %v3831_v42, 16  ;;  %vm1519_vm6 = vc.u32 %v1511_v17, %v1515_v33  ;;  %v3841_v18 = vadd.s32 %v1515_v33, %v1511_v17 }
 0x116   :  { %v1493_v39 = vshll.u32 %v3813_v15, 16  ;;  %v1495_v1 = vshll.u32 %v3823_v52, 16  ;;  %v1492_v50 = vmul.u32 %v1488_v43, %v1486_v26  ;;  %v1665_v40 = vmul.u32 %v1663_v35, %v1639_v0 }
 0x117   :  { %v3844_v37 = vmul.u32 %v1663_v35, %v1640_v21  ;;  %v1669_v36 = vshll.u32 %v3836_v13, 16  ;;  %v1520_v61 = vsel %vm1519_vm6, 1, %v4618_v12  ;;  %v1643_v54 = vmul.u32 %v1641_v27, %v1639_v0 }
 0x118   :  { %vm1497_vm5 = vc.u32 %v1489_v29, %v1493_v39  ;;  %v1499_v7 = vadd.s32 %v1493_v39, %v1489_v29  ;;  %v3850_v29 = vmul.u32 %v1641_v27, %v1640_v21  ;;  %v1647_v39 = vshll.u32 %v3838_v14, 16 }
 0x119   :  { %v1498_v58 = vsel %vm1497_vm5, 1, %v4618_v12  ;;  %vm1523_vm8 = vc.u32 %v3841_v18, %v4577_v10  ;;  %v1522_v33 = vadd.s32 %v1520_v61, %v1514_v34  ;;  %vm1673_vm9 = vc.u32 %v1665_v40, %v1669_v36 }
 0x11a   :  { %vm1501_vm7 = vc.u32 %v1499_v7, %v1495_v1  ;;  %v1500_v25 = vadd.s32 %v1498_v58, %v1492_v50  ;;  %v3862_v0 = vadd.s32 %v1669_v36, %v1665_v40  ;;  %v1524_v7 = vsel %vm1523_vm8, 1, %v4618_v12 }
 0x11b   :  { %v1502_v26 = vsel %vm1501_vm7, 1, %v4618_v12  ;;  %v1649_v35 = vshll.u32 %v3850_v29, 16  ;;  %vm1651_vm11 = vc.u32 %v1643_v54, %v1647_v39  ;;  %v1653_v27 = vadd.s32 %v1647_v39, %v1643_v54 }
 0x11c   :  { %v1668_v57 = vmul.u32 %v1664_v46, %v1640_v21  ;;  %v1494_v10 = vshrl.u32 %v3813_v15, 16  ;;  %v1516_v50 = vshrl.u32 %v3819_v38, 16  ;;  %v1646_v58 = vmul.u32 %v1642_v60, %v1640_v21 }
 0x11d   :  { %v1674_v34 = vsel %vm1673_vm9, 1, %v4618_v12  ;;  %v1504_v61 = vadd.s32 %v1502_v26, %v1500_v25  ;;  %v1526_v1 = vadd.s32 %v1524_v7, %v1522_v33  ;;  %v1652_v40 = vsel %vm1651_vm11, 1, %v4618_v12 }
 0x11e   :  { %v4619_v36 = vshll.u32 %v3844_v37, 16  ;;  %vm1655_vm5 = vc.u32 %v1653_v27, %v1649_v35  ;;  %v1676_v54 = vadd.s32 %v1674_v34, %v1668_v57  ;;  %v1452_v38 = vshrl.u32 %v4617_v5, %v3707_v31 }
 0x11f   :  { %v1496_v60 = vshrl.u32 %v3823_v52, 16  ;;  %v1654_v21 = vadd.s32 %v1652_v40, %v1646_v58  ;;  %v1505_v26 = vadd.s32 %v1504_v61, %v1494_v10  ;;  %v1518_v33 = vshrl.u32 %v3831_v42, 16 }
 0x120   :  { %vm1677_vm12 = vc.u32 %v3862_v0, %v4619_v36  ;;  %v1527_v7 = vadd.s32 %v1526_v1, %v1516_v50  ;;  %v1656_v35 = vsel %vm1655_vm5, 1, %v4618_v12  ;;  %v1473_v57 = vsel %vm1471_vm13, %v3734_v59, 2102212464 }
 0x121   :  { %v1678_v25 = vsel %vm1677_vm12, 1, %v4618_v12  ;;  %v1670_v34 = vshrl.u32 %v3836_v13, 16  ;;  %v1472_v10 = vsel %vm1468_vm14, %v1452_v38, %v3747_v63  ;;  %v1606_v12 = vshrl.u32 %v4617_v5, %v3727_v53 }
 0x122   :  { %v1680_v31 = vadd.s32 %v1678_v25, %v1676_v54  ;;  %v1648_v1 = vshrl.u32 %v3838_v14, 16  ;;  %v1658_v50 = vadd.s32 %v1656_v35, %v1654_v21  ;;  %v3904_v13 = vadd.s32 %v1505_v26, %v1496_v60 }
 0x123   :  { %v4622_v58 = vshll.u32 %v3831_v42, 16  ;;  %v1528_v63 = vadd.s32 %v1527_v7, %v1518_v33  ;;  %v1672_v5 = vshrl.u32 %v3844_v37, 16  ;;  %v1650_v21 = vshrl.u32 %v3850_v29, 16 }
 0x124   :  { %v1681_v54 = vadd.s32 %v1680_v31, %v1670_v34  ;;  %v1659_v25 = vadd.s32 %v1658_v50, %v1648_v1  ;;  %vm1592_vm6 = vcmp.lt.s32.totalorder %v3704_v20, 0 }
 0x125   :  { %v3909_v61 = vadd.s32 %v3841_v18, %v4622_v58  ;;  %v1532_v26 = vadd.s32 1, %v1528_v63 }
 0x126   :  { %v1682_v29 = vadd.s32 %v1681_v54, %v1672_v5  ;;  %v3941_v34 = vadd.s32 %v1659_v25, %v1650_v21 }
 0x127   :  { %vm1531_vm13 = vc.u32 %v3904_v13, %v3909_v61 }
 0x141   :  { %v3911_v40 = vpop.permute.xlu2 %1011 }
 0x142   :  { %4623 = vst [vmem:[#allocation12_spill] sm:$0xff] %v3911_v40 }
 0x14e   :  { %v3875_v39 = vpop.permute.xlu1 %1016 }
 0x14f   :  { %4620 = vst [vmem:[#allocation10_spill] sm:$0xff] %v3875_v39 }
 0x158   :  { %v3926_v33 = vpop.permute.xlu1 %1006 }
 0x159   :  { %4624 = vst [vmem:[#allocation21_spill] sm:$0xff] %v3926_v33 }
 0x15a   :  { %v3899_v59 = vpop.permute.xlu0 %1021 }
 0x15b   :  { %4621 = vst [vmem:[#allocation19_spill] sm:$0xff] %v3899_v59 }
 0x16d   :  { %v3827_v44 = vpop.f32.mrf.mxu0 }
 0x16e   :  { %v3829_v55 = vpop.f32.mrf.mxu1  ;;  %v1055_v3 = vadd.f32 %v3827_v44, %v3926_v33  ;;  %v4625_v44 = vshll.u32 %v3844_v37, 16 }
 0x16f   :  { %v1084_v35 = vadd.f32 %v3829_v55, %v3926_v33 }
 0x175   :  { %v3847_v45 = vpop.f32.mrf.mxu0 }
 0x176   :  { %v3853_v17 = vpop.f32.mrf.mxu1 }
 0x177   :  { %v3858_v43 = vpop.f32.mrf.mxu2  ;;  %v1087_v18 = vadd.f32 %v3853_v17, %v3911_v40 }
 0x17b   :  { %v3866_v16 = vpop.f32.mrf.mxu3 }
 0x17d   :  { %v1060_v56 = vpop.f32.mrf.mxu0 }
 0x17e   :  { %v1089_v46 = vpop.f32.mrf.mxu1  ;;  %v1061_v27 = vadd.f32 %v1060_v56, %v3875_v39  ;;  %v1474_v56 = vsel %vm1470_vm15, %v3732_v51, %v1473_v57  ;;  %v1058_v51 = vadd.f32 %v3847_v45, %v3911_v40  ;;  %v1627_v45 = vsel %vm1625_vm1, %v3787_v32, 2102212464 }
 0x17f   :  { %v3877_v15 = vpop.f32.mrf.mxu2  ;;  %v1090_v52 = vadd.f32 %v1089_v46, %v3875_v39  ;;  %v1475_v60 = vsel %vm1469_vm0, %v1472_v10, %v1474_v56  ;;  %v1626_v32 = vsel %vm1622_vm2, %v1606_v12, %v3783_v48  ;;  %v1686_v48 = vadd.s32 1, %v1682_v29 }
 0x180   :  { %2829 = vtanh.f32 %v1061_v27  ;;  %v1529_v17 = vmul.u32 %v3769_v49, %v1475_v60  ;;  %v1628_v27 = vsel %vm1624_vm3, %v3785_v4, %v1627_v45  ;;  %v3946_v49 = vadd.s32 %v3862_v0, %v4625_v44 }
 0x181   :  { %2831 = vtanh.f32 %v1090_v52  ;;  %v1533_v52 = vsel %vm1531_vm13, %v1532_v26, %v1528_v63  ;;  %v1629_v1 = vsel %vm1623_vm4, %v1626_v32, %v1628_v27  ;;  %v1116_v23 = vadd.f32 %v3877_v15, %v3911_v40  ;;  %v26_v27 = vld [vmem:[%s4531_s0 + $0x30] sm:$0xff] }
 0x182   :  { %v1534_v50 = vadd.s32 %v1533_v52, %v1529_v17  ;;  %vm1685_vm14 = vc.u32 %v3941_v34, %v3946_v49  ;;  %v1683_v58 = vmul.u32 %v3815_v62, %v1629_v1  ;;  %v1142_v60 = vadd.f32 %v3866_v16, %v3926_v33  ;;  %v27_v1 = vld [vmem:[%s4531_s0 + $0x38] sm:$0xff] }
 0x183   :  { %v3890_v36 = vpop.f32.mrf.mxu3  ;;  %v1687_v63 = vsel %vm1685_vm14, %v1686_v48, %v1682_v29  ;;  %vm1438_vm3 = vcmp.lt.s32.totalorder %v3698_v47, 0  ;;  %vm1579_vm14 = vweird.f32 %v3698_v47 }
 0x185   :  { %v1063_v53 = vpop.f32.mrf.mxu0 }
 0x186   :  { %v1064_v14 = vadd.f32 %v1063_v53, %v3899_v59  ;;  %v1092_v46 = vpop.f32.mrf.mxu1  ;;  %v2830_v57 = vpop.eup %2829  ;;  %v1113_v53 = vadd.f32 %v3858_v43, %v3926_v33  ;;  %v1145_v43 = vadd.f32 %v3890_v36, %v3911_v40  ;;  %v25_v36 = vld [vmem:[%s4531_s0 + $0x28] sm:$0xff] }
 0x187   :  { %v1118_v38 = vpop.f32.mrf.mxu2  ;;  %v1093_v42 = vadd.f32 %v1092_v46, %v3899_v59  ;;  %v2832_v31 = vpop.eup %2831 }
 0x188   :  { %2833 = vtanh.f32 %v1064_v14  ;;  %v1119_v37 = vadd.f32 %v1118_v38, %v3875_v39  ;;  %v24_v14 = vld [vmem:[%s4531_s0 + $0x20] sm:$0xff]  ;;  %v1688_v38 = vadd.s32 %v1687_v63, %v1683_v58 }
 0x189   :  { %2835 = vtanh.f32 %v1093_v42 }
 0x18a   :  { %2837 = vtanh.f32 %v1058_v51  ;;  %v1535_v51 = vadd.s32 536870912, %v1534_v50  ;;  %v1689_v25 = vadd.s32 536870912, %v1688_v38 }
 0x18b   :  { %v1147_v7 = vpop.f32.mrf.mxu3  ;;  %2839 = vtanh.f32 %v1087_v18 }
 0x18c   :  { %2841 = vtanh.f32 %v1055_v3  ;;  %v1148_v54 = vadd.f32 %v1147_v7, %v3875_v39  ;;  %v3968_v18 = vshrl.u32 %v1535_v51, 30  ;;  %v3976_v16 = vshrl.u32 %v1689_v25, 30  ;;  %v4648_v39 = vld [vmem:[#allocation13_spill] sm:$0xff] }
 0x18d   :  { %2843 = vtanh.f32 %v1084_v35  ;;  %v1684_v51 = vadd.s32 %v3946_v49, %v3941_v34  ;;  %v4626_v34 = vand.u32 2147483647, %v3698_v47 }
 0x18e   :  { %v2834_v10 = vpop.eup %2833  ;;  %v1537_v3 = vshll.u32 %v3968_v18, 30  ;;  %v1691_v32 = vshll.u32 %v3976_v16, 30 }
 0x18f   :  { %v2836_v55 = vpop.eup %2835  ;;  %v1121_v12 = vpop.f32.mrf.mxu2  ;;  %1213 = vmatpush.msrb.mxu0 %v2834_v10  ;;  %vm4006_vm4 = vcmp.le.f32.partialorder %v4626_v34, 0.7853982 }
 0x190   :  { %v2838_v4 = vpop.eup %2837  ;;  %v1122_v0 = vadd.f32 %v1121_v12, %v3899_v59  ;;  %1242 = vmatpush.msrb.mxu1 %v2836_v55  ;;  %v1538_v35 = vsub.s32 %v1534_v50, %v1537_v3 }
 0x191   :  { %v2840_v56 = vpop.eup %2839  ;;  %1214 = vmatpush.msrb.mxu0 %v2830_v57 }
 0x192   :  { %2845 = vtanh.f32 %v1122_v0  ;;  %1243 = vmatpush.msrb.mxu1 %v2832_v31  ;;  %v2842_v46 = vpop.eup %2841  ;;  %v1540_v44 = vsub.s32 0, %v1538_v35  ;;  %vm1539_vm15 = vcmp.lt.s32.totalorder %v1538_v35, 0  ;;  %v1692_v31 = vsub.s32 %v1688_v38, %v1691_v32 }
 0x193   :  { %v1150_v5 = vpop.f32.mrf.mxu3  ;;  %1215 = vmatpush.msrb.mxu0 %v2838_v4  ;;  %2847 = vtanh.f32 %v1119_v37  ;;  %v2844_v62 = vpop.eup %2843  ;;  %v4629_v32 = vand.u32 2147483647, %v3704_v20 }
 0x194   :  { %v1151_v15 = vadd.f32 %v1150_v5, %v3899_v59  ;;  %1244 = vmatpush.msrb.mxu1 %v2840_v56  ;;  %2849 = vtanh.f32 %v1116_v23  ;;  %v1541_v52 = vsel %vm1539_vm15, %v1540_v44, %v1538_v35  ;;  %v1694_v10 = vsub.s32 0, %v1692_v31 }
 0x195   :  { %1216 = vmatpush.msrb.mxu0 %v2842_v46  ;;  %v1542_v55 = vclz %v1541_v52  ;;  %vm1693_vm0 = vcmp.lt.s32.totalorder %v1692_v31, 0  ;;  %v1530_v23 = vadd.s32 %v3909_v61, %v3904_v13  ;;  %vm4018_vm7 = vcmp.le.f32.partialorder %v4629_v32, 0.7853982 }
 0x196   :  { %2851 = vtanh.f32 %v1151_v15  ;;  %1245 = vmatpush.msrb.mxu1 %v2844_v62  ;;  %2696 = vmatmul.msk.f32.vlgmr.msrb.gmra.mxu0 %vm1024_vm10, %v24_v14  ;;  %v1695_v48 = vsel %vm1693_vm0, %v1694_v10, %v1692_v31 }
 0x197   :  { %2853 = vtanh.f32 %v1113_v53  ;;  %2700 = vmatmul.msk.f32.vlgmr.msrb.gmra.mxu1 %vm1024_vm10, %v24_v14  ;;  %v2717_v12 = vadd.s32 4294967294, %v1542_v55  ;;  %v1696_v4 = vclz %v1695_v48 }
 0x198   :  { %v2846_v42 = vpop.eup %2845  ;;  %2855 = vtanh.f32 %v1148_v54 }
 0x199   :  { %1271 = vmatpush.msrb.mxu2 %v2846_v42  ;;  %v2848_v21 = vpop.eup %2847  ;;  %2857 = vtanh.f32 %v1145_v43  ;;  %vm2718_vm1 = vcmp.lt.s32.totalorder %v2717_v12, 0  ;;  %v2720_v50 = vadd.s32 4294967294, %v1696_v4 }
 0x19a   :  { %v2850_v26 = vpop.eup %2849  ;;  %2859 = vtanh.f32 %v1142_v60  ;;  %v1545_v37 = vsel %vm2718_vm1, 0, %v2717_v12 }
 0x19b   :  { %1272 = vmatpush.msrb.mxu2 %v2848_v21  ;;  %v1550_v0 = vsub.s32 4294967266, %v1545_v37  ;;  %vm2721_vm2 = vcmp.lt.s32.totalorder %v2720_v50, 0  ;;  %v1546_v58 = vsub.s32 32, %v1545_v37  ;;  %v1547_v5 = vshll.u32 %v1538_v35, %v1545_v37 }
 0x19c   :  { %v2852_v45 = vpop.eup %2851  ;;  %v1699_v56 = vsel %vm2721_vm2, 0, %v2720_v50 }
 0x19d   :  { %v2854_v17 = vpop.eup %2853  ;;  %1300 = vmatpush.msrb.mxu3 %v2852_v45  ;;  %1273 = vmatpush.msrb.mxu2 %v2850_v26  ;;  %v1551_v63 = vadd.s32 127, %v1550_v0  ;;  %v1704_v53 = vsub.s32 4294967266, %v1699_v56  ;;  %v1700_v54 = vsub.s32 32, %v1699_v56  ;;  %v1701_v43 = vshll.u32 %v1692_v31, %v1699_v56 }
 0x19e   :  { %v2856_v29 = vpop.eup %2855  ;;  %2697 = vmatmul.msk.f32.gmra.mxu0 %vm1024_vm10, %v25_v36 }
 0x19f   :  { %1301 = vmatpush.msrb.mxu3 %v2856_v29  ;;  %1274 = vmatpush.msrb.mxu2 %v2854_v17  ;;  %v2858_v7 = vpop.eup %2857  ;;  %v1552_v46 = vshll.u32 %v1551_v63, 23  ;;  %v1705_v15 = vadd.s32 127, %v1704_v53  ;;  %v1702_v42 = vshrl.u32 %v1684_v51, %v1700_v54  ;;  %v1560_v63 = vsub.s32 4, %v3968_v18 }
 0x1a0   :  { %2704 = vmatmul.msk.f32.vlgmr.msrb.gmra.mxu2 %vm1024_vm10, %v24_v14  ;;  %2701 = vmatmul.msk.f32.gmra.mxu1 %vm1024_vm10, %v25_v36  ;;  %v2860_v57 = vpop.eup %2859 }
 0x1a1   :  { %1302 = vmatpush.msrb.mxu3 %v2858_v7  ;;  %v1553_v38 = vor.u32 4788187, %v1552_v46  ;;  %v1706_v60 = vshll.u32 %v1705_v15, 23  ;;  %v1703_v26 = vor.u32 %v1702_v42, %v1701_v43  ;;  %v1561_v51 = vsel %vm1438_vm3, %v1560_v63, %v3968_v18 }
 0x1a3   :  { %1303 = vmatpush.msrb.mxu3 %v2860_v57  ;;  %v1554_v21 = vand.u32 2147483647, %v1553_v38  ;;  %v1707_v13 = vor.u32 4788187, %v1706_v60  ;;  %v1710_v45 = vcvt.s32.f32 %v1703_v26  ;;  %v1563_v38 = vsel %vm4006_vm4, 0, %v1561_v51 }
 0x1a4   :  { %2708 = vmatmul.msk.f32.vlgmr.msrb.gmra.mxu3 %vm1024_vm10, %v24_v14  ;;  %v1548_v14 = vshrl.u32 %v1530_v23, %v1546_v58  ;;  %v1888_v60 = vadd.s32 3, %v1563_v38  ;;  %v1580_v26 = vand.u32 3, %v1563_v38 }
 0x1a6   :  { %2698 = vmatmul.msk.f32.gmra.mxu0 %vm1024_vm10, %v26_v27  ;;  %v1549_v62 = vor.u32 %v1548_v14, %v1547_v5  ;;  %v1889_v18 = vand.u32 3, %v1888_v60  ;;  %vm1582_vm8 = vcmp.eq.s32.totalorder %v1580_v26, 0  ;;  %vm1585_vm9 = vcmp.eq.s32.totalorder %v1580_v26, 2 }
 0x1a7   :  { %vm1581_vm5 = vcmp.lt.s32.totalorder %v1580_v26, 2  ;;  %v2150_v60 = vperm.slane %v3704_v20, 1  ;;  %v4632_v26 = vld [vmem:[#allocation11_spill] sm:$0xff] }
 0x1a8   :  { %2705 = vmatmul.msk.f32.gmra.mxu2 %vm1024_vm10, %v25_v36  ;;  %2702 = vmatmul.msk.f32.gmra.mxu1 %vm1024_vm10, %v26_v27  ;;  %v1556_v25 = vcvt.s32.f32 %v1549_v62  ;;  %v1714_v62 = vsub.s32 4, %v3976_v16  ;;  %vm1891_vm11 = vcmp.eq.s32.totalorder %v1889_v18, 0  ;;  %vm1894_vm12 = vcmp.eq.s32.totalorder %v1889_v18, 2 }
 0x1a9   :  { %vm1890_vm13 = vcmp.lt.s32.totalorder %v1889_v18, 2 }
 0x1aa   :  { %v1557_v61 = vmul.f32 %v1556_v25, %v1554_v21 }
 0x1ac   :  { %2709 = vmatmul.msk.f32.gmra.mxu3 %vm1024_vm10, %v25_v36  ;;  %v1708_v36 = vand.u32 2147483647, %v1707_v13  ;;  %v1558_v3 = vxor.u32 2147483648, %v1557_v61  ;;  %v1715_v13 = vsel %vm1592_vm6, %v1714_v62, %v3976_v16 }
 0x1ae   :  { %2699 = vmatmul.msk.f32.gmra.mxu0 %vm1024_vm10, %v27_v1  ;;  %v1711_v17 = vmul.f32 %v1710_v45, %v1708_v36  ;;  %v1559_v29 = vsel %vm1438_vm3, %v1558_v3, %v1557_v61 }
 0x1af   :  { %v1562_v35 = vsel %vm4006_vm4, %v3698_v47, %v1559_v29  ;;  %vm1733_vm4 = vweird.f32 %v3704_v20 }
 0x1b0   :  { %2706 = vmatmul.msk.f32.gmra.mxu2 %vm1024_vm10, %v26_v27  ;;  %2703 = vmatmul.msk.f32.gmra.mxu1 %vm1024_vm10, %v27_v1  ;;  %v1712_v7 = vxor.u32 2147483648, %v1711_v17  ;;  %v1564_v57 = vmul.f32 %v1562_v35, %v1562_v35 }
 0x1b2   :  { %v1713_v44 = vsel %vm1592_vm6, %v1712_v7, %v1711_v17  ;;  %v1572_v52 = vmul.f32 -0.00019511016, %v1564_v57  ;;  %v1565_v55 = vmul.f32 -0.001358992, %v1564_v57  ;;  %v1717_v17 = vsel %vm4018_vm7, 0, %v1715_v13 }
 0x1b3   :  { %v1716_v31 = vsel %vm4018_vm7, %v3704_v20, %v1713_v44  ;;  %v2043_v34 = vadd.s32 3, %v1717_v17  ;;  %v1734_v7 = vand.u32 3, %v1717_v17  ;;  %v2193_v17 = vperm.slane %v3698_v47, 6 }
 0x1b4   :  { %2710 = vmatmul.msk.f32.gmra.mxu3 %vm1024_vm10, %v26_v27  ;;  %v1718_v10 = vmul.f32 %v1716_v31, %v1716_v31  ;;  %v1566_v12 = vadd.f32 0.041655596, %v1565_v55  ;;  %vm1427_vm7 = vcmask 1043456  }
 0x1b5   :  { %v2044_v16 = vand.u32 3, %v2043_v34  ;;  %vm1736_vm15 = vcmp.eq.s32.totalorder %v1734_v7, 0  ;;  %vm1739_vm0 = vcmp.eq.s32.totalorder %v1734_v7, 2  ;;  %vm1735_vm1 = vcmp.lt.s32.totalorder %v1734_v7, 2 }
 0x1b6   :  { %v1726_v48 = vmul.f32 -0.00019511016, %v1718_v10  ;;  %v1719_v50 = vmul.f32 -0.001358992, %v1718_v10  ;;  %v1567_v0 = vmul.f32 %v1566_v12, %v1564_v57  ;;  %v2195_v7 = vperm.slane %v3704_v20, 6 }
 0x1b7   :  { %vm2046_vm2 = vcmp.eq.s32.totalorder %v2044_v16, 0  ;;  %vm2049_vm3 = vcmp.eq.s32.totalorder %v2044_v16, 2  ;;  %vm2045_vm6 = vcmp.lt.s32.totalorder %v2044_v16, 2  ;;  %v4070_v16 = vperm.slane %v2150_v60, 1 }
 0x1b8   :  { %2707 = vmatmul.msk.f32.gmra.mxu2 %vm1024_vm10, %v27_v1  ;;  %v1727_v37 = vadd.f32 0.008332121, %v1726_v48  ;;  %v1720_v23 = vadd.f32 0.041655596, %v1719_v50  ;;  %v1568_v53 = vadd.f32 -0.4999988, %v1567_v0 }
 0x1ba   :  { %v1728_v58 = vmul.f32 %v1727_v37, %v1718_v10  ;;  %v1721_v14 = vmul.f32 %v1720_v23, %v1718_v10  ;;  %v1569_v54 = vmul.f32 %v1568_v53, %v1564_v57 }
 0x1bc   :  { %2711 = vmatmul.msk.f32.gmra.mxu3 %vm1024_vm10, %v27_v1  ;;  %v1573_v1 = vadd.f32 0.008332121, %v1572_v52  ;;  %v1729_v46 = vadd.f32 -0.16666654, %v1728_v58  ;;  %v1722_v43 = vadd.f32 -0.4999988, %v1721_v14 }
 0x1bd   :  { %v1570_v21 = vadd.f32 1.0, %v1569_v54  ;;  %v2148_v14 = vperm.slane %v3698_v47, 1 }
 0x1be   :  { %v1574_v4 = vmul.f32 %v1573_v1, %v1564_v57  ;;  %v1730_v42 = vmul.f32 %v1729_v46, %v1718_v10  ;;  %v1723_v61 = vmul.f32 %v1722_v43, %v1718_v10  ;;  %v2149_v46 = vperm.slane %v3698_v47, 5 }
 0x1bf   :  { %v1586_v3 = vxor.u32 2147483648, %v1570_v21 }
 0x1c0   :  { %v1575_v56 = vadd.f32 -0.16666654, %v1574_v4  ;;  %v1731_v36 = vadd.f32 1.0, %v1730_v42  ;;  %v1724_v49 = vadd.f32 1.0, %v1723_v61  ;;  %v4060_v61 = vperm.slane %v2148_v14, 1 }
 0x1c2   :  { %v1576_v5 = vmul.f32 %v1575_v56, %v1564_v57  ;;  %v1732_v29 = vmul.f32 %v1731_v36, %v1716_v31  ;;  %v1740_v44 = vxor.u32 2147483648, %v1724_v49  ;;  %v4062_v36 = vperm.slane %v2149_v46, 1 }
 0x1c3   :  { %v4189_v33 = vmul.f32 %v4060_v61, %v3375_v24 }
 0x1c4   :  { %v1577_v15 = vadd.f32 1.0, %v1576_v5  ;;  %v1737_v32 = vxor.u32 2147483648, %v1732_v29  ;;  %v1741_v48 = vsel %vm1739_vm0, %v1740_v44, %v1732_v29  ;;  %v2051_v0 = vsel %vm2049_vm3, %v1740_v44, %v1732_v29 }
 0x1c5   :  { %v2194_v29 = vperm.slane %v3704_v20, 2 }
 0x1c6   :  { %v1578_v25 = vmul.f32 %v1577_v15, %v1562_v35  ;;  %v1738_v1 = vsel %vm1736_vm15, %v1724_v49, %v1737_v32  ;;  %v2048_v37 = vsel %vm2046_vm2, %v1724_v49, %v1737_v32 }
 0x1c7   :  { %v1742_v4 = vsel %vm1735_vm1, %v1738_v1, %v1741_v48  ;;  %v2052_v53 = vsel %vm2045_vm6, %v2048_v37, %v2051_v0 }
 0x1c8   :  { %v1583_v45 = vxor.u32 2147483648, %v1578_v25  ;;  %v1587_v57 = vsel %vm1585_vm9, %v1586_v3, %v1578_v25  ;;  %v1896_v10 = vsel %vm1894_vm12, %v1586_v3, %v1578_v25  ;;  %v1743_v63 = vsel %vm1733_vm4, nan, %v1742_v4 }
 0x1c9   :  { %v2058_v54 = vperm.slane %v1743_v63, 0  ;;  %v2053_v15 = vsel %vm1733_vm4, nan, %v2052_v53  ;;  %v2059_v43 = vperm.slane %v1743_v63, 4  ;;  %v2192_v3 = vperm.slane %v3698_v47, 2  ;;  %v4635_v63 = vld [vmem:[#allocation14_spill] sm:$0xff] }
 0x1ca   :  { %v1584_v35 = vsel %vm1582_vm8, %v1570_v21, %v1583_v45  ;;  %v1893_v52 = vsel %vm1891_vm11, %v1570_v21, %v1583_v45  ;;  %v2151_v21 = vperm.slane %v3704_v20, 5  ;;  %v2104_v45 = vperm.slane %v2053_v15, 0 }
 0x1cb   :  { %v1588_v27 = vsel %vm1581_vm5, %v1584_v35, %v1587_v57  ;;  %v1897_v55 = vsel %vm1890_vm13, %v1893_v52, %v1896_v10  ;;  %v2066_v34 = vperm.slane %v2058_v54, 0  ;;  %v2105_v49 = vperm.slane %v2053_v15, 4  ;;  %v4633_v10 = vld [vmem:[#allocation5_spill] sm:$0xff] }
 0x1cc   :  { %v1589_v31 = vsel %vm1579_vm14, nan, %v1588_v27  ;;  %v1898_v12 = vsel %vm1579_vm14, nan, %v1897_v55  ;;  %v2067_v35 = vperm.slane %v2059_v43, 0  ;;  %v4072_v32 = vperm.slane %v2151_v21, 1  ;;  %v4636_v43 = vld [vmem:[#allocation6_spill] sm:$0xff] }
 0x1cd   :  { %v2056_v50 = vperm.slane %v1589_v31, 0  ;;  %v2057_v56 = vperm.slane %v1589_v31, 4  ;;  %v2102_v23 = vperm.slane %v1898_v12, 0  ;;  %v2103_v58 = vperm.slane %v1898_v12, 4 }
 0x1ce   :  { %v4089_v12 = vperm.slane %v2104_v45, 0  ;;  %v4091_v4 = vperm.slane %v2192_v3, 2  ;;  %v2082_v37 = vmul.f32 %v2066_v34, %v4632_v26  ;;  %v4096_v0 = vperm.slane %v2105_v49, 0 }
 0x1cf   :  { %v2064_v5 = vperm.slane %v2056_v50, 0  ;;  %v2065_v51 = vperm.slane %v2057_v56, 0  ;;  %v4047_v62 = vperm.slane %v2102_v23, 0  ;;  %v4049_v38 = vperm.slane %v2103_v58, 0 }
 0x1d0   :  { %v4093_v50 = vperm.slane %v2193_v17, 2  ;;  %v4098_v56 = vperm.slane %v2194_v29, 2  ;;  %v4100_v23 = vperm.slane %v2195_v7, 2  ;;  %v2083_v58 = vmul.f32 %v2067_v35, %v4632_v26 }
 0x1d1   :  { %v4052_v42 = vmul.f32 %v2064_v5, %v3264_v28  ;;  %v4057_v25 = vmul.f32 %v2065_v51, %v3264_v28  ;;  %v2080_v13 = vmul.f32 %v2064_v5, %v4632_v26  ;;  %v2081_v18 = vmul.f32 %v2065_v51, %v4632_v26 }
 0x1d2   :  { %v2068_v57 = vmul.f32 %v2064_v5, %v4611_v2  ;;  %v2069_v52 = vmul.f32 %v2065_v51, %v4611_v2  ;;  %v4080_v55 = vmul.f32 %v4047_v62, %v3365_v41  ;;  %v4084_v31 = vmul.f32 %v4049_v38, %v3365_v41  ;;  %4634 = vst [vmem:[#allocation11_spill] sm:$0xff] %v4100_v23 }
 0x1d3   :  { %v2096_v27 = vadd.f32 %v2080_v13, %v4633_v10  ;;  %v2097_v48 = vadd.f32 %v2081_v18, %v4633_v10  ;;  %v2076_v53 = vmul.f32 %v2064_v5, %v4635_v63  ;;  %v2077_v14 = vmul.f32 %v2065_v51, %v4635_v63 }
 0x1d4   :  { %v2078_v46 = vmul.f32 %v2066_v34, %v4635_v63  ;;  %v4107_v54 = vmul.f32 %v2066_v34, %v3264_v28  ;;  %v2079_v15 = vmul.f32 %v2067_v35, %v4635_v63  ;;  %v2126_v60 = vmul.f32 %v4047_v62, %v4636_v43 }
 0x1d5   :  { %v2127_v21 = vmul.f32 %v4049_v38, %v4636_v43  ;;  %v4115_v13 = vmul.f32 %v2067_v35, %v3264_v28  ;;  %v2070_v5 = vmul.f32 %v2066_v34, %v4611_v2  ;;  %v2071_v51 = vmul.f32 %v2067_v35, %v4611_v2  ;;  %v4639_v34 = vld [vmem:[#allocation9_spill] sm:$0xff] }
 0x1d6   :  { %v4121_v26 = vmul.f32 %v4089_v12, %v3365_v41  ;;  %v2098_v18 = vadd.f32 %v2082_v37, %v4633_v10  ;;  %v4126_v45 = vmul.f32 %v4096_v0, %v3365_v41  ;;  %v2128_v3 = vmul.f32 %v4089_v12, %v4636_v43 }
 0x1d7   :  { %v2129_v28 = vmul.f32 %v4096_v0, %v4636_v43  ;;  %v2099_v17 = vadd.f32 %v2083_v58, %v4633_v10  ;;  %v4134_v2 = vadd.f32 %v2076_v53, %v4639_v34  ;;  %v4137_v49 = vadd.f32 %v2077_v14, %v4639_v34 }
 0x1d8   :  { %4637 = vst [vmem:[#allocation5_spill] sm:$0xff] %v4121_v26  ;;  %v4140_v29 = vadd.f32 %v2078_v46, %v4639_v34  ;;  %v4145_v41 = vadd.f32 %v2079_v15, %v4639_v34  ;;  %v2142_v35 = vadd.f32 %v2126_v60, %v2096_v27  ;;  %v2143_v37 = vadd.f32 %v2127_v21, %v2097_v48  ;;  %v4643_v34 = vld [vmem:[#allocation7_spill] sm:$0xff] }
 0x1d9   :  { %4638 = vst [vmem:[#allocation14_spill] sm:$0xff] %v4126_v45  ;;  %v2236_v63 = vperm.slane %v3698_v47, 3  ;;  %v2084_v10 = vadd.f32 %v2068_v57, %v3369_v8  ;;  %v4150_v58 = vadd.f32 %v2069_v52, %v3369_v8  ;;  %v4153_v53 = vadd.f32 %v2070_v5, %v3369_v8  ;;  %v4644_v21 = vld [vmem:[#allocation15_spill] sm:$0xff] }
 0x1da   :  { %4640 = vst [vmem:[#allocation6_spill] sm:$0xff] %v4145_v41  ;;  %v4156_v14 = vadd.f32 %v2071_v51, %v3369_v8  ;;  %v2144_v43 = vadd.f32 %v2128_v3, %v2098_v18  ;;  %v2145_v15 = vadd.f32 %v2129_v28, %v2099_v17  ;;  %v2172_v27 = vmul.f32 %v4060_v61, %v4643_v34  ;;  %v4645_v51 = vld [vmem:[#allocation8_spill] sm:$0xff] }
 0x1db   :  { %4641 = vst [vmem:[#allocation9_spill] sm:$0xff] %v4153_v53  ;;  %v2237_v48 = vperm.slane %v3698_v47, 7  ;;  %v2173_v57 = vmul.f32 %v4062_v36, %v4643_v34  ;;  %v2174_v52 = vmul.f32 %v4070_v16, %v4643_v34  ;;  %v2175_v60 = vmul.f32 %v4072_v32, %v4643_v34 }
 0x1dc   :  { %4642 = vst [vmem:[#allocation22_spill] sm:$0xff] %v4156_v14  ;;  %v2238_v8 = vperm.slane %v3704_v20, 3  ;;  %v2122_v5 = vmul.f32 %v4047_v62, %v4644_v21  ;;  %v2216_v18 = vmul.f32 %v4091_v4, %v4645_v51  ;;  %v2239_v3 = vperm.slane %v3704_v20, 7 }
 0x1dd   :  { %v4175_v47 = vperm.slane %v2236_v63, 3  ;;  %v2123_v28 = vmul.f32 %v4049_v38, %v4644_v21  ;;  %v4181_v17 = vmul.f32 %v4089_v12, %v4644_v21  ;;  %v4185_v34 = vmul.f32 %v4096_v0, %v4644_v21 }
 0x1de   :  { %v2188_v40 = vadd.f32 %v2172_v27, %v2142_v35  ;;  %v4193_v20 = vmul.f32 %v4062_v36, %v3375_v24  ;;  %v4197_v63 = vmul.f32 %v4070_v16, %v3375_v24  ;;  %v2189_v45 = vadd.f32 %v2173_v57, %v2143_v37  ;;  %v4651_v37 = vld [vmem:[#allocation16_spill] sm:$0xff] }
 0x1df   :  { %4646 = vst [vmem:[#allocation7_spill] sm:$0xff] %v4185_v34  ;;  %v2260_v59 = vmul.f32 %v4175_v47, %v4648_v39  ;;  %v4201_v14 = vadd.f32 %v2174_v52, %v2144_v43  ;;  %v4203_v21 = vadd.f32 %v2175_v60, %v2145_v15  ;;  %v4207_v26 = vmul.f32 %v4072_v32, %v3375_v24 }
 0x1e0   :  { %4647 = vst [vmem:[#allocation15_spill] sm:$0xff] %v4197_v63  ;;  %v2217_v34 = vmul.f32 %v4093_v50, %v4645_v51  ;;  %v2232_v41 = vadd.f32 %v2216_v18, %v2188_v40  ;;  %v4213_v63 = vperm.slane %v2237_v48, 3  ;;  %v4215_v53 = vperm.slane %v2238_v8, 3  ;;  %v4235_v18 = vpop.permute.xlu2 %1186 }
 0x1e1   :  { %4649 = vst [vmem:[#allocation8_spill] sm:$0xff] %v4207_v26  ;;  %v2168_v43 = vmul.f32 %v4060_v61, %v4651_v37  ;;  %v2169_v15 = vmul.f32 %v4062_v36, %v4651_v37  ;;  %v2114_v24 = vmul.f32 %v4047_v62, %v3294_v19  ;;  %v4223_v57 = vperm.slane %v2239_v3, 3 }
 0x1e2   :  { %v4227_v60 = vmul.f32 %v4070_v16, %v4651_v37  ;;  %v4231_v40 = vmul.f32 %v4072_v32, %v4651_v37  ;;  %v2261_v48 = vmul.f32 %v4213_v63, %v4648_v39  ;;  %v2276_v8 = vadd.f32 %v2260_v59, %v2232_v41 }
 0x1e3   :  { %4652 = vst [vmem:[#allocation16_spill] sm:$0xff] %v4223_v57  ;;  %v2088_v62 = vadd.f32 %v4052_v42, %v3251_v6  ;;  %v2089_v3 = vadd.f32 %v4057_v25, %v3251_v6  ;;  %v4243_v26 = vadd.f32 %v4107_v54, %v3251_v6  ;;  %v4247_v37 = vadd.f32 %v4115_v13, %v3251_v6 }
 0x1e4   :  { %4653 = vst [vmem:[#allocation23_spill] sm:$0xff] %v4231_v40  ;;  %v2160_v59 = vmul.f32 %v4060_v61, %v3384_v22  ;;  %v2161_v41 = vmul.f32 %v4062_v36, %v3384_v22  ;;  %v2233_v42 = vadd.f32 %v2217_v34, %v2189_v45  ;;  %v2115_v25 = vmul.f32 %v4049_v38, %v3294_v19  ;;  %v4658_v45 = vld [vmem:[#allocation17_spill] sm:$0xff] }
 0x1e5   :  { %4654 = vst [vmem:[#allocation24_spill] sm:$0xff] %v4243_v26  ;;  %v4259_v54 = vmul.f32 %v4070_v16, %v3384_v22  ;;  %v4263_v6 = vmul.f32 %v4098_v56, %v4645_v51  ;;  %v2138_v13 = vadd.f32 %v2122_v5, %v4134_v2  ;;  %v4268_v61 = vmul.f32 %v4100_v23, %v4645_v51  ;;  %v4281_v5 = vpop.permute.xlu0 %1181 }
 0x1e6   :  { %4655 = vst [vmem:[#allocation25_spill] sm:$0xff] %v4247_v37  ;;  %v4270_v36 = vadd.f32 %v2261_v48, %v2233_v42  ;;  %2861 = vtanh.f32 %v2276_v8  ;;  %v2212_v38 = vmul.f32 %v4091_v4, %v4658_v45  ;;  %v2139_v2 = vadd.f32 %v2123_v28, %v4137_v49  ;;  %v4291_v28 = vpop.permute.xlu1 %1176 }
 0x1e7   :  { %4657 = vst [vmem:[#allocation27_spill] sm:$0xff] %v4259_v54  ;;  %v2184_v37 = vadd.f32 %v2168_v43, %v2138_v13  ;;  %v4660_v54 = vld [vmem:[#allocation18_spill] sm:$0xff]  ;;  %v2134_v48 = vadd.f32 %v4080_v55, %v2088_v62  ;;  %v2131_v8 = vadd.f32 %v2115_v25, %v4150_v58  ;;  %v2204_v49 = vmul.f32 %v4091_v4, %v3584_v11 }
 0x1e8   :  { %v2256_v40 = vmul.f32 %v4175_v47, %v4660_v54  ;;  %v2185_v13 = vadd.f32 %v2169_v15, %v2139_v2  ;;  %v2135_v57 = vadd.f32 %v4084_v31, %v2089_v3  ;;  %v4304_v62 = vpop.permute.xlu2 %1171  ;;  %v2205_v31 = vmul.f32 %v4093_v50, %v3584_v11 }
 0x1e9   :  { %v2208_v3 = vmul.f32 %v4091_v4, %v3467_v9 }
 0x1ec   :  { %v4302_v15 = vpop.eup %2861 }
 0x213   :  { %v4074_v44 = vpop.f32.mrf.mxu0 }
 0x214   :  { %v4086_v1 = vpop.f32.mrf.mxu1 }
 0x21b   :  { %v4142_v7 = vpop.f32.mrf.mxu0 }
 0x21c   :  { %v1222_v55 = vadd.f32 %v4142_v7, %v4291_v28  ;;  %v1219_v7 = vadd.f32 %v4074_v44, %v4304_v62  ;;  %v2180_v44 = vadd.f32 %v4189_v33, %v2134_v48 }
 0x21d   :  { %v4158_v46 = vpop.f32.mrf.mxu1 }
 0x223   :  { %v4209_v35 = vpop.f32.mrf.mxu2  ;;  %v1224_v27 = vpop.f32.mrf.mxu0 }
 0x224   :  { %4650 = vst [vmem:[#allocation13_spill] sm:$0xff] %v4209_v35  ;;  %v1225_v43 = vadd.f32 %v1224_v27, %v4281_v5 }
 0x225   :  { %v1253_v52 = vpop.f32.mrf.mxu1 }
 0x226   :  { %v1254_v23 = vadd.f32 %v1253_v52, %v4281_v5  ;;  %v1251_v52 = vadd.f32 %v4158_v46, %v4291_v28  ;;  %v2209_v46 = vmul.f32 %v4093_v50, %v3467_v9 }
 0x227   :  { %v4249_v35 = vpop.f32.mrf.mxu3 }
 0x228   :  { %4656 = vst [vmem:[#allocation26_spill] sm:$0xff] %v4249_v35  ;;  %v2130_v35 = vadd.f32 %v2114_v24, %v2084_v10  ;;  %v2213_v10 = vmul.f32 %v4093_v50, %v4658_v45  ;;  %v2257_v24 = vmul.f32 %v4213_v63, %v4660_v54  ;;  %v2224_v50 = vadd.f32 %v2208_v3, %v2180_v44  ;;  %v4665_v3 = vld [vmem:[#allocation7_spill] sm:$0xff]  ;;  %v4669_v44 = vld [vmem:[#allocation5_spill] sm:$0xff] }
 0x22a   :  { %v2176_v26 = vadd.f32 %v2160_v59, %v2130_v35  ;;  %v2229_v27 = vadd.f32 %v2213_v10, %v2185_v13  ;;  %v2140_v35 = vadd.f32 %v4181_v17, %v4140_v29  ;;  %v1248_v17 = vadd.f32 %v4086_v1, %v4304_v62 }
 0x22b   :  { %v4274_v34 = vpop.f32.mrf.mxu2  ;;  %v1227_v16 = vpop.f32.mrf.mxu0  ;;  %v2248_v59 = vmul.f32 %v4175_v47, %v3596_v30 }
 0x22c   :  { %4659 = vst [vmem:[#allocation17_spill] sm:$0xff] %v4274_v34  ;;  %v1228_v51 = vadd.f32 %v1227_v16, %v4235_v18  ;;  %v2228_v34 = vadd.f32 %v2212_v38, %v2184_v37  ;;  %v2177_v37 = vadd.f32 %v2161_v41, %v2131_v8  ;;  %v2220_v29 = vadd.f32 %v2204_v49, %v2176_v26  ;;  %v4661_v38 = vld [vmem:[#allocation20_spill] sm:$0xff] }
 0x22d   :  { %v1256_v42 = vpop.f32.mrf.mxu1  ;;  %v2252_v2 = vmul.f32 %v4175_v47, %v4661_v38  ;;  %v2273_v4 = vadd.f32 %v2257_v24, %v2229_v27  ;;  %v2181_v26 = vadd.f32 %v4193_v20, %v2135_v57  ;;  %v2253_v1 = vmul.f32 %v4213_v63, %v4661_v38 }
 0x22e   :  { %v1257_v16 = vadd.f32 %v1256_v42, %v4235_v18  ;;  %2863 = vtanh.f32 %v1228_v51  ;;  %v2272_v25 = vadd.f32 %v2256_v40, %v2228_v34  ;;  %v2221_v10 = vadd.f32 %v2205_v31, %v2177_v37 }
 0x22f   :  { %v4298_v58 = vpop.f32.mrf.mxu3  ;;  %v2249_v51 = vmul.f32 %v4213_v63, %v3596_v30  ;;  %v2225_v33 = vadd.f32 %v2209_v46, %v2181_v26  ;;  %v2264_v34 = vadd.f32 %v2248_v59, %v2220_v29  ;;  %v2214_v47 = vmul.f32 %v4098_v56, %v4658_v45  ;;  %v4667_v59 = vld [vmem:[#allocation11_spill] sm:$0xff] }
 0x230   :  { %2865 = vtanh.f32 %v1257_v16  ;;  %v2116_v20 = vmul.f32 %v4089_v12, %v3294_v19  ;;  %v2262_v57 = vmul.f32 %v4215_v53, %v4648_v39  ;;  %v2268_v63 = vadd.f32 %v2252_v2, %v2224_v50 }
 0x231   :  { %2867 = vtanh.f32 %v1225_v43  ;;  %v4337_v43 = vmul.f32 %v4072_v32, %v3384_v22  ;;  %v2269_v42 = vadd.f32 %v2253_v1, %v2225_v33  ;;  %v2186_v13 = vadd.f32 %v4227_v60, %v2140_v35  ;;  %v4351_v32 = vld [vmem:[%s4531_s0 + $0x60] sm:$0xf]  ;;  %v4670_v1 = vld [vmem:[#allocation23_spill] sm:$0xff] }
 0x232   :  { %2869 = vtanh.f32 %v1254_v23  ;;  %v2234_v12 = vadd.f32 %v4263_v6, %v4201_v14  ;;  %v2265_v16 = vadd.f32 %v2249_v51, %v2221_v10  ;;  %v2117_v22 = vmul.f32 %v4096_v0, %v3294_v19  ;;  %v4662_v6 = vld [vmem:[#allocation16_spill] sm:$0xff]  ;;  %v4663_v19 = vld [vmem:[#allocation9_spill] sm:$0xff]  ;;  %v4672_v33 = vld [vmem:[#allocation27_spill] sm:$0xff] }
 0x233   :  { %2871 = vtanh.f32 %v1222_v55  ;;  %v1282_v41 = vpop.f32.mrf.mxu2  ;;  %v2230_v60 = vadd.f32 %v2214_v47, %v2186_v13  ;;  %v2258_v14 = vmul.f32 %v4215_v53, %v4660_v54  ;;  %v2132_v0 = vadd.f32 %v2116_v20, %v4663_v19  ;;  %v4671_v51 = vld [vmem:[#allocation13_spill] sm:$0xff]  ;;  %v4674_v13 = vld [vmem:[#allocation15_spill] sm:$0xff] }
 0x234   :  { %2873 = vtanh.f32 %v1251_v52  ;;  %v2864_v23 = vpop.eup %2863  ;;  %v4359_v27 = vadd.f32 %v2262_v57, %v2234_v12  ;;  %v1283_v37 = vadd.f32 %v1282_v41, %v4281_v5  ;;  %v4668_v41 = vld [vmem:[#allocation24_spill] sm:$0xff]  ;;  %v2259_v50 = vmul.f32 %v4662_v6, %v4660_v54  ;;  %v4675_v12 = vld [vmem:[#allocation25_spill] sm:$0xff] }
 0x235   :  { %2875 = vtanh.f32 %v1219_v7  ;;  %1353 = vmatpush.msra.mxu0 %v2864_v23  ;;  %v4664_v7 = vld [vmem:[#allocation6_spill] sm:$0xff]  ;;  %v2136_v2 = vadd.f32 %v4669_v44, %v4668_v41  ;;  %v2274_v26 = vadd.f32 %v2258_v14, %v2230_v60  ;;  %v2206_v47 = vmul.f32 %v4098_v56, %v3584_v11 }
 0x236   :  { %v2866_v40 = vpop.eup %2865  ;;  %2877 = vtanh.f32 %v1248_v17  ;;  %v2141_v29 = vadd.f32 %v4665_v3, %v4664_v7  ;;  %v2210_v54 = vmul.f32 %v4098_v56, %v3467_v9  ;;  %v1309_v60 = vadd.f32 %v4298_v58, %v4291_v28  ;;  %v4677_v58 = vld [vmem:[#allocation26_spill] sm:$0xff]  ;;  %v4678_v3 = vld [vmem:[#allocation8_spill] sm:$0xff] }
 0x237   :  { %v2868_v24 = vpop.eup %2867  ;;  %2879 = vtanh.f32 %v4270_v36  ;;  %v1311_v48 = vpop.f32.mrf.mxu3  ;;  %1373 = vmatpush.msra.mxu1 %v2866_v40  ;;  %v4344_v36 = vadd.f32 %v4268_v61, %v4203_v21  ;;  %v4357_v61 = vmul.f32 %v4662_v6, %v4648_v39  ;;  %v4666_v39 = vld [vmem:[#allocation17_spill] sm:$0xff]  ;;  %v2250_v56 = vmul.f32 %v4215_v53, %v3596_v30 }
 0x238   :  { %v2870_v8 = vpop.eup %2869  ;;  %1354 = vmatpush.msra.mxu0 %v2868_v24  ;;  %2881 = vtanh.f32 %v2272_v25  ;;  %v1280_v46 = vadd.f32 %v4666_v39, %v4291_v28  ;;  %v2215_v25 = vmul.f32 %v4667_v59, %v4658_v45  ;;  %v2187_v23 = vadd.f32 %v4670_v1, %v2141_v29  ;;  %v4673_v24 = vld [vmem:[#allocation22_spill] sm:$0xff] }
 0x239   :  { %v2872_v49 = vpop.eup %2871  ;;  %1374 = vmatpush.msra.mxu1 %v2870_v8  ;;  %2883 = vtanh.f32 %v2273_v4  ;;  %v1277_v45 = vadd.f32 %v4671_v51, %v4304_v62  ;;  %v2133_v20 = vadd.f32 %v2117_v22, %v4673_v24  ;;  %v1312_v57 = vadd.f32 %v1311_v48, %v4281_v5 }
 0x23a   :  { %v2874_v55 = vpop.eup %2873  ;;  %1355 = vmatpush.msra.mxu0 %v2872_v49  ;;  %2885 = vtanh.f32 %v2264_v34  ;;  %v2178_v34 = vadd.f32 %v4672_v33, %v2132_v0  ;;  %v2182_v49 = vadd.f32 %v4674_v13, %v2136_v2  ;;  %v2254_v48 = vmul.f32 %v4215_v53, %v4661_v38  ;;  %v2992_v33 = vld [vmem:[%s4531_s0 + $0x18] sm:$0xff] }
 0x23b   :  { %v2876_v21 = vpop.eup %2875  ;;  %v1285_v35 = vpop.f32.mrf.mxu2  ;;  %1375 = vmatpush.msra.mxu1 %v2874_v55  ;;  %2887 = vtanh.f32 %v2268_v63  ;;  %v2207_v19 = vmul.f32 %v4667_v59, %v3584_v11  ;;  %v2279_v53 = vadd.f32 %v4357_v61, %v4344_v36  ;;  %v2989_v11 = vld [vmem:[%s4531_s0] sm:$0xff]  ;;  %v2255_v36 = vmul.f32 %v4662_v6, %v4661_v38 }
 0x23c   :  { %v2878_v52 = vpop.eup %2877  ;;  %v1286_v31 = vadd.f32 %v1285_v35, %v4235_v18  ;;  %1356 = vmatpush.msra.mxu0 %v2876_v21  ;;  %2889 = vtanh.f32 %v2269_v42  ;;  %v2231_v42 = vadd.f32 %v2215_v25, %v2187_v23  ;;  %v2222_v21 = vadd.f32 %v2206_v47, %v2178_v34  ;;  %v4446_v47 = vpop.permute.xlu0 %1335 }
 0x23d   :  { %v2880_v17 = vpop.eup %2879  ;;  %1376 = vmatpush.msra.mxu1 %v2878_v52  ;;  %2712 = vmatmul.msk.f32.vlgmr.msra.gmra.mxu0 %vm1024_vm10, %v4351_v32  ;;  %2891 = vtanh.f32 %v2265_v16  ;;  %v4676_v16 = vld [vmem:[#allocation14_spill] sm:$0xff]  ;;  %v2179_v35 = vadd.f32 %v4337_v43, %v2133_v20  ;;  %v1306_v52 = vadd.f32 %v4677_v58, %v4304_v62  ;;  %v2251_v29 = vmul.f32 %v4662_v6, %v3596_v30 }
 0x23e   :  { %v2882_v4 = vpop.eup %2881  ;;  %2893 = vtanh.f32 %v1286_v31  ;;  %2713 = vmatmul.msk.f32.vlgmr.msra.gmra.mxu1 %vm1024_vm10, %v4351_v32  ;;  %2308 = vmatpush.msrb.mxu0 %v4302_v15  ;;  %v2137_v55 = vadd.f32 %v4676_v16, %v4675_v12  ;;  %v2211_v31 = vmul.f32 %v4667_v59, %v3467_v9 }
 0x23f   :  { %v2884_v10 = vpop.eup %2883  ;;  %v1314_v40 = vpop.f32.mrf.mxu3  ;;  %2337 = vmatpush.msrb.mxu1 %v2880_v17  ;;  %2895 = vtanh.f32 %v1283_v37  ;;  %v2226_v37 = vadd.f32 %v2210_v54, %v2182_v49  ;;  %v2223_v59 = vadd.f32 %v2207_v19, %v2179_v35  ;;  %v4679_v19 = vld [vmem:[#allocation19_spill] sm:$0xff] }
 0x240   :  { %v2886_v15 = vpop.eup %2885  ;;  %v1315_v63 = vadd.f32 %v1314_v40, %v4235_v18  ;;  %2309 = vmatpush.msrb.mxu0 %v2882_v4  ;;  %2897 = vtanh.f32 %v1280_v46  ;;  %v2183_v9 = vadd.f32 %v4678_v3, %v2137_v55  ;;  %v2266_v46 = vadd.f32 %v2250_v56, %v2222_v21  ;;  %v2991_v40 = vld [vmem:[%s4531_s0 + $0x10] sm:$0xff] }
 0x241   :  { %v2888_v8 = vpop.eup %2887  ;;  %2338 = vmatpush.msrb.mxu1 %v2884_v10  ;;  %v2270_v7 = vadd.f32 %v2254_v48, %v2226_v37  ;;  %v2267_v30 = vadd.f32 %v2251_v29, %v2223_v59 }
 0x242   :  { %v2890_v22 = vpop.eup %2889  ;;  %2899 = vtanh.f32 %v1315_v63  ;;  %2310 = vmatpush.msrb.mxu0 %v2888_v8  ;;  %v2227_v39 = vadd.f32 %v2211_v31, %v2183_v9  ;;  %v4682_v9 = vld [vmem:[#allocation21_spill] sm:$0xff] }
 0x243   :  { %v2892_v14 = vpop.eup %2891  ;;  %2901 = vtanh.f32 %v1277_v45  ;;  %2339 = vmatpush.msrb.mxu1 %v2890_v22 }
 0x244   :  { %v2894_v0 = vpop.eup %2893  ;;  %2903 = vtanh.f32 %v1312_v57  ;;  %2311 = vmatpush.msrb.mxu0 %v2886_v15  ;;  %v2271_v44 = vadd.f32 %v2255_v36, %v2227_v39 }
 0x245   :  { %2905 = vtanh.f32 %v4359_v27  ;;  %1393 = vmatpush.msra.mxu2 %v2894_v0  ;;  %2340 = vmatpush.msrb.mxu1 %v2892_v14  ;;  %v2896_v43 = vpop.eup %2895  ;;  %v2275_v27 = vadd.f32 %v2259_v50, %v2231_v42 }
 0x246   :  { %2907 = vtanh.f32 %v1309_v60  ;;  %2728 = vmatmul.msk.f32.vlgmr.msrb.gmra.mxu0 %vm1024_vm10, %v2989_v11  ;;  %2732 = vmatmul.msk.f32.vlgmr.msrb.gmra.mxu1 %vm1024_vm10, %v2989_v11  ;;  %v2898_v61 = vpop.eup %2897 }
 0x247   :  { %1394 = vmatpush.msra.mxu2 %v2896_v43  ;;  %2909 = vtanh.f32 %v2274_v26  ;;  %v2990_v26 = vld [vmem:[%s4531_s0 + $0x8] sm:$0xff]  ;;  %v4681_v43 = vld [vmem:[#allocation12_spill] sm:$0xff] }
 0x248   :  { %v2900_v17 = vpop.eup %2899  ;;  %2911 = vtanh.f32 %v1306_v52  ;;  %v4680_v52 = vld [vmem:[#allocation10_spill] sm:$0xff] }
 0x249   :  { %v2902_v25 = vpop.eup %2901  ;;  %2913 = vtanh.f32 %v2279_v53  ;;  %1413 = vmatpush.msra.mxu3 %v2900_v17  ;;  %1395 = vmatpush.msra.mxu2 %v2898_v61 }
 0x24a   :  { %v2904_v41 = vpop.eup %2903  ;;  %2915 = vtanh.f32 %v2270_v7 }
 0x24b   :  { %v2906_v38 = vpop.eup %2905  ;;  %1414 = vmatpush.msra.mxu3 %v2904_v41  ;;  %1396 = vmatpush.msra.mxu2 %v2902_v25  ;;  %2917 = vtanh.f32 %v2275_v27 }
 0x24c   :  { %v2908_v2 = vpop.eup %2907  ;;  %2714 = vmatmul.msk.f32.vlgmr.msra.gmra.mxu2 %vm1024_vm10, %v4351_v32  ;;  %2919 = vtanh.f32 %v2266_v46 }
 0x24d   :  { %v2910_v6 = vpop.eup %2909  ;;  %1415 = vmatpush.msra.mxu3 %v2908_v2  ;;  %2366 = vmatpush.msrb.mxu2 %v2906_v38  ;;  %2921 = vtanh.f32 %v2271_v44 }
 0x24e   :  { %v2912_v4 = vpop.eup %2911  ;;  %2729 = vmatmul.msk.f32.gmra.mxu0 %vm1024_vm10, %v2990_v26  ;;  %2733 = vmatmul.msk.f32.gmra.mxu1 %vm1024_vm10, %v2990_v26  ;;  %2923 = vtanh.f32 %v2267_v30  ;;  %v2993_v30 = vld [vmem:[%s4531_s0 + $0x20] sm:$0xff] }
 0x24f   :  { %v2914_v1 = vpop.eup %2913  ;;  %1416 = vmatpush.msra.mxu3 %v2912_v4  ;;  %2367 = vmatpush.msrb.mxu2 %v2910_v6 }
 0x250   :  { %v2916_v23 = vpop.eup %2915  ;;  %2715 = vmatmul.msk.f32.vlgmr.msra.gmra.mxu3 %vm1024_vm10, %v4351_v32 }
 0x251   :  { %v2918_v50 = vpop.eup %2917  ;;  %2395 = vmatpush.msrb.mxu3 %v2914_v1  ;;  %2368 = vmatpush.msrb.mxu2 %v2916_v23 }
 0x252   :  { %v2920_v10 = vpop.eup %2919 }
 0x253   :  { %2396 = vmatpush.msrb.mxu3 %v2918_v50  ;;  %2369 = vmatpush.msrb.mxu2 %v2920_v10  ;;  %v2922_v51 = vpop.eup %2921 }
 0x254   :  { %2736 = vmatmul.msk.f32.vlgmr.msrb.gmra.mxu2 %vm1024_vm10, %v2989_v11  ;;  %v2924_v45 = vpop.eup %2923 }
 0x255   :  { %2397 = vmatpush.msrb.mxu3 %v2922_v51 }
 0x256   :  { %2730 = vmatmul.msk.f32.gmra.mxu0 %vm1024_vm10, %v2991_v40  ;;  %2734 = vmatmul.msk.f32.gmra.mxu1 %vm1024_vm10, %v2991_v40 }
 0x257   :  { %2398 = vmatpush.msrb.mxu3 %v2924_v45  ;;  %v2994_v45 = vld [vmem:[%s4531_s0 + $0x28] sm:$0xff] }
 0x258   :  { %2740 = vmatmul.msk.f32.vlgmr.msrb.gmra.mxu3 %vm1024_vm10, %v2989_v11 }
 0x25c   :  { %2737 = vmatmul.msk.f32.gmra.mxu2 %vm1024_vm10, %v2990_v26 }
 0x25e   :  { %2731 = vmatmul.msk.f32.gmra.mxu0 %vm1024_vm10, %v2992_v33  ;;  %2735 = vmatmul.msk.f32.gmra.mxu1 %vm1024_vm10, %v2992_v33 }
 0x260   :  { %2741 = vmatmul.msk.f32.gmra.mxu3 %vm1024_vm10, %v2990_v26 }
 0x264   :  { %2738 = vmatmul.msk.f32.gmra.mxu2 %vm1024_vm10, %v2991_v40 }
 0x268   :  { %2742 = vmatmul.msk.f32.gmra.mxu3 %vm1024_vm10, %v2991_v40 }
 0x26c   :  { %2739 = vmatmul.msk.f32.gmra.mxu2 %vm1024_vm10, %v2992_v33 }
 0x270   :  { %2743 = vmatmul.msk.f32.gmra.mxu3 %vm1024_vm10, %v2992_v33 }
 0x2ba   :  { %v1358_v34 = vpop.f32.mrf.mxu0 }
 0x2bb   :  { %v1378_v24 = vpop.f32.mrf.mxu1  ;;  %v1359_v15 = vadd.f32 %v1358_v34, %v4446_v47 }
 0x2bc   :  { %v1379_v20 = vadd.f32 %v1378_v24, %v4446_v47 }
 0x2be   :  { %v1425_v57 = vrot.slane %v1379_v20, 4 }
 0x2c0   :  { %v1428_v63 = vsel %vm1427_vm7, %v1359_v15, %v1425_v57 }
 0x2c1   :  { %1432 = vst [vmem:[#allocation2] sm:$0xff] %v1428_v63 }
 0x2c3   :  { %v2313_v54 = vpop.f32.mrf.mxu0  ;;  %v2342_v8 = vpop.f32.mrf.mxu1 }
 0x2c4   :  { %v2314_v36 = vadd.f32 %v2313_v54, %v4682_v9  ;;  %v2343_v61 = vadd.f32 %v2342_v8, %v4682_v9  ;;  %v2995_v54 = vld [vmem:[%s4531_s0 + $0x30] sm:$0xff] }
 0x2cb   :  { %v2316_v42 = vpop.f32.mrf.mxu0  ;;  %v2345_v13 = vpop.f32.mrf.mxu1 }
 0x2cc   :  { %v2317_v11 = vadd.f32 %v2316_v42, %v4681_v43  ;;  %v2346_v3 = vadd.f32 %v2345_v13, %v4681_v43  ;;  %v2996_v13 = vld [vmem:[%s4531_s0 + $0x38] sm:$0xff]  ;;  %s3034_s0 = smov [#allocation2]  }
 0x2cd   :  { %s2657_s28 = sshll.u32 %s3034_s0, 4  ;;  %s2658_s28 = int_to_ptr.vmem [resolvable:$true] %s2657_s28 }
 0x2cf   :  { %v1398_v49 = vpop.f32.mrf.mxu2 }
 0x2d0   :  { %v1399_v60 = vadd.f32 %v1398_v49, %v4446_v47 }
 0x2d3   :  { %v1418_v12 = vpop.f32.mrf.mxu3  ;;  %v2319_v16 = vpop.f32.mrf.mxu0 }
 0x2d4   :  { %v1419_v55 = vadd.f32 %v1418_v12, %v4446_v47  ;;  %v2348_v22 = vpop.f32.mrf.mxu1  ;;  %v2320_v37 = vadd.f32 %v2319_v16, %v4680_v52 }
 0x2d5   :  { %v2349_v53 = vadd.f32 %v2348_v22, %v4680_v52 }
 0x2d6   :  { %v1426_v48 = vrot.slane %v1419_v55, 4 }
 0x2d7   :  { %v2371_v56 = vpop.f32.mrf.mxu2 }
 0x2d8   :  { %v1429_v14 = vsel %vm1427_vm7, %v1399_v60, %v1426_v48  ;;  %v2372_v23 = vadd.f32 %v2371_v56, %v4682_v9 }
 0x2d9   :  { %1433 = vst [vmem:[#allocation2 + $0x8] sm:$0xff] %v1429_v14 }
 0x2db   :  { %v2400_v21 = vpop.f32.mrf.mxu3  ;;  %v2322_v35 = vpop.f32.mrf.mxu0 }
 0x2dc   :  { %v2323_v0 = vadd.f32 %v2322_v35, %v4679_v19  ;;  %v2351_v58 = vpop.f32.mrf.mxu1  ;;  %v2401_v34 = vadd.f32 %v2400_v21, %v4682_v9 }
 0x2dd   :  { %v2352_v31 = vadd.f32 %v2351_v58, %v4679_v19 }
 0x2de   :  { %2925 = vtanh.f32 %v2323_v0 }
 0x2df   :  { %v2374_v7 = vpop.f32.mrf.mxu2  ;;  %2927 = vtanh.f32 %v2352_v31 }
 0x2e0   :  { %2929 = vtanh.f32 %v2320_v37  ;;  %v2375_v1 = vadd.f32 %v2374_v7, %v4681_v43 }
 0x2e1   :  { %2931 = vtanh.f32 %v2349_v53 }
 0x2e2   :  { %2933 = vtanh.f32 %v2317_v11 }
 0x2e3   :  { %v2403_v27 = vpop.f32.mrf.mxu3  ;;  %2935 = vtanh.f32 %v2346_v3 }
 0x2e4   :  { %v2926_v29 = vpop.eup %2925  ;;  %2937 = vtanh.f32 %v2314_v36  ;;  %v2404_v40 = vadd.f32 %v2403_v27, %v4681_v43 }
 0x2e5   :  { %v2928_v17 = vpop.eup %2927  ;;  %2939 = vtanh.f32 %v2343_v61  ;;  %2440 = vmatpush.msra.mxu0 %v2926_v29 }
 0x2e6   :  { %v2930_v39 = vpop.eup %2929  ;;  %2469 = vmatpush.msra.mxu1 %v2928_v17 }
 0x2e7   :  { %v2377_v46 = vpop.f32.mrf.mxu2  ;;  %v2932_v59 = vpop.eup %2931  ;;  %2441 = vmatpush.msra.mxu0 %v2930_v39 }
 0x2e8   :  { %v2934_v25 = vpop.eup %2933  ;;  %2470 = vmatpush.msra.mxu1 %v2932_v59  ;;  %v2378_v4 = vadd.f32 %v2377_v46, %v4680_v52 }
 0x2e9   :  { %v2936_v41 = vpop.eup %2935  ;;  %2442 = vmatpush.msra.mxu0 %v2934_v25 }
 0x2ea   :  { %v2938_v44 = vpop.eup %2937  ;;  %2471 = vmatpush.msra.mxu1 %v2936_v41 }
 0x2eb   :  { %v2406_v38 = vpop.f32.mrf.mxu3  ;;  %v2940_v2 = vpop.eup %2939  ;;  %2443 = vmatpush.msra.mxu0 %v2938_v44 }
 0x2ec   :  { %2472 = vmatpush.msra.mxu1 %v2940_v2  ;;  %2744 = vmatmul.msk.f32.vlgmr.msra.gmra.mxu0 %vm1024_vm10, %v2993_v30  ;;  %v2407_v10 = vadd.f32 %v2406_v38, %v4680_v52 }
 0x2ed   :  { %2748 = vmatmul.msk.f32.vlgmr.msra.gmra.mxu1 %vm1024_vm10, %v2993_v30 }
 0x2ef   :  { %v2380_v6 = vpop.f32.mrf.mxu2 }
 0x2f0   :  { %v2381_v26 = vadd.f32 %v2380_v6, %v4679_v19 }
 0x2f2   :  { %2941 = vtanh.f32 %v2381_v26 }
 0x2f3   :  { %v2409_v50 = vpop.f32.mrf.mxu3  ;;  %2943 = vtanh.f32 %v2378_v4 }
 0x2f4   :  { %v2410_v51 = vadd.f32 %v2409_v50, %v4679_v19  ;;  %2945 = vtanh.f32 %v2375_v1  ;;  %2745 = vmatmul.msk.f32.gmra.mxu0 %vm1024_vm10, %v2994_v45 }
 0x2f5   :  { %2749 = vmatmul.msk.f32.gmra.mxu1 %vm1024_vm10, %v2994_v45 }
 0x2f6   :  { %2947 = vtanh.f32 %v2410_v51 }
 0x2f7   :  { %2949 = vtanh.f32 %v2372_v23 }
 0x2f8   :  { %v2942_v33 = vpop.eup %2941  ;;  %2951 = vtanh.f32 %v2407_v10 }
 0x2f9   :  { %2498 = vmatpush.msra.mxu2 %v2942_v33  ;;  %v2944_v24 = vpop.eup %2943  ;;  %2953 = vtanh.f32 %v2404_v40 }
 0x2fa   :  { %v2946_v20 = vpop.eup %2945  ;;  %2955 = vtanh.f32 %v2401_v34 }
 0x2fb   :  { %2499 = vmatpush.msra.mxu2 %v2944_v24 }
 0x2fc   :  { %v2948_v15 = vpop.eup %2947  ;;  %2746 = vmatmul.msk.f32.gmra.mxu0 %vm1024_vm10, %v2995_v54 }
 0x2fd   :  { %v2950_v57 = vpop.eup %2949  ;;  %2527 = vmatpush.msra.mxu3 %v2948_v15  ;;  %2500 = vmatpush.msra.mxu2 %v2946_v20 }
 0x2fe   :  { %v2952_v63 = vpop.eup %2951  ;;  %2750 = vmatmul.msk.f32.gmra.mxu1 %vm1024_vm10, %v2995_v54 }
 0x2ff   :  { %2528 = vmatpush.msra.mxu3 %v2952_v63  ;;  %2501 = vmatpush.msra.mxu2 %v2950_v57  ;;  %v2954_v8 = vpop.eup %2953 }
 0x300   :  { %2752 = vmatmul.msk.f32.vlgmr.msra.gmra.mxu2 %vm1024_vm10, %v2993_v30  ;;  %v2956_v42 = vpop.eup %2955 }
 0x301   :  { %2529 = vmatpush.msra.mxu3 %v2954_v8 }
 0x303   :  { %2530 = vmatpush.msra.mxu3 %v2956_v42 }
 0x304   :  { %2756 = vmatmul.msk.f32.vlgmr.msra.gmra.mxu3 %vm1024_vm10, %v2993_v30  ;;  %2747 = vmatmul.msk.f32.gmra.mxu0 %vm1024_vm10, %v2996_v13 }
 0x306   :  { %2751 = vmatmul.msk.f32.gmra.mxu1 %vm1024_vm10, %v2996_v13 }
 0x308   :  { %2753 = vmatmul.msk.f32.gmra.mxu2 %vm1024_vm10, %v2994_v45 }
 0x30c   :  { %2757 = vmatmul.msk.f32.gmra.mxu3 %vm1024_vm10, %v2994_v45 }
 0x310   :  { %2754 = vmatmul.msk.f32.gmra.mxu2 %vm1024_vm10, %v2995_v54 }
 0x314   :  { %2758 = vmatmul.msk.f32.gmra.mxu3 %vm1024_vm10, %v2995_v54 }
 0x318   :  { %2755 = vmatmul.msk.f32.gmra.mxu2 %vm1024_vm10, %v2996_v13 }
 0x31c   :  { %2759 = vmatmul.msk.f32.gmra.mxu3 %vm1024_vm10, %v2996_v13 }
 0x369   :  { %v2445_v49 = vpop.f32.mrf.mxu0 }
 0x36a   :  { %v2474_v12 = vpop.f32.mrf.mxu1  ;;  %v2446_v31 = vadd.f32 %v2445_v49, %v4304_v62 }
 0x36b   :  { %v2475_v53 = vadd.f32 %v2474_v12, %v4304_v62 }
 0x371   :  { %v2448_v16 = vpop.f32.mrf.mxu0 }
 0x372   :  { %v2477_v55 = vpop.f32.mrf.mxu1  ;;  %v2449_v58 = vadd.f32 %v2448_v16, %v4291_v28 }
 0x373   :  { %v2478_v52 = vadd.f32 %v2477_v55, %v4291_v28 }
 0x379   :  { %v2451_v22 = vpop.f32.mrf.mxu0 }
 0x37a   :  { %v2452_v14 = vadd.f32 %v2451_v22, %v4281_v5 }
 0x37b   :  { %v2480_v60 = vpop.f32.mrf.mxu1 }
 0x37c   :  { %v2481_v0 = vadd.f32 %v2480_v60, %v4281_v5 }
 0x381   :  { %v2454_v48 = vpop.f32.mrf.mxu0 }
 0x382   :  { %v2455_v21 = vadd.f32 %v2454_v48, %v4235_v18 }
 0x383   :  { %v2483_v56 = vpop.f32.mrf.mxu1  ;;  %v2503_v19 = vpop.f32.mrf.mxu2 }
 0x384   :  { %v2484_v35 = vadd.f32 %v2483_v56, %v4235_v18  ;;  %2957 = vtanh.f32 %v2455_v21  ;;  %v2504_v6 = vadd.f32 %v2503_v19, %v4304_v62 }
 0x386   :  { %2959 = vtanh.f32 %v2484_v35 }
 0x387   :  { %v2532_v37 = vpop.f32.mrf.mxu3  ;;  %2961 = vtanh.f32 %v2452_v14 }
 0x388   :  { %2963 = vtanh.f32 %v2481_v0  ;;  %v2533_v26 = vadd.f32 %v2532_v37, %v4304_v62 }
 0x389   :  { %2965 = vtanh.f32 %v2449_v58 }
 0x38a   :  { %2967 = vtanh.f32 %v2478_v52  ;;  %v2958_v43 = vpop.eup %2957 }
 0x38b   :  { %2969 = vtanh.f32 %v2446_v31  ;;  %v2506_v11 = vpop.f32.mrf.mxu2  ;;  %2572 = vmatpush.msrb.mxu0 %v2958_v43 }
 0x38c   :  { %v2960_v7 = vpop.eup %2959  ;;  %2971 = vtanh.f32 %v2475_v53  ;;  %v2507_v44 = vadd.f32 %v2506_v11, %v4291_v28 }
 0x38d   :  { %v2962_v3 = vpop.eup %2961  ;;  %2592 = vmatpush.msrb.mxu1 %v2960_v7 }
 0x38e   :  { %v2964_v9 = vpop.eup %2963  ;;  %2573 = vmatpush.msrb.mxu0 %v2962_v3 }
 0x38f   :  { %v2535_v36 = vpop.f32.mrf.mxu3  ;;  %v2966_v61 = vpop.eup %2965  ;;  %2593 = vmatpush.msrb.mxu1 %v2964_v9 }
 0x390   :  { %v2968_v27 = vpop.eup %2967  ;;  %2574 = vmatpush.msrb.mxu0 %v2966_v61  ;;  %v2536_v4 = vadd.f32 %v2535_v36, %v4291_v28 }
 0x391   :  { %v2970_v29 = vpop.eup %2969  ;;  %2594 = vmatpush.msrb.mxu1 %v2968_v27 }
 0x392   :  { %v2972_v17 = vpop.eup %2971  ;;  %2575 = vmatpush.msrb.mxu0 %v2970_v29 }
 0x393   :  { %v2509_v39 = vpop.f32.mrf.mxu2  ;;  %2595 = vmatpush.msrb.mxu1 %v2972_v17  ;;  %2760 = vmatmul.msk.f32.vlgmr.msrb.gmra.mxu0 %vm1024_vm10, %v4351_v32 }
 0x394   :  { %2761 = vmatmul.msk.f32.vlgmr.msrb.gmra.mxu1 %vm1024_vm10, %v4351_v32  ;;  %v2510_v25 = vadd.f32 %v2509_v39, %v4281_v5 }
 0x397   :  { %v2538_v46 = vpop.f32.mrf.mxu3 }
 0x398   :  { %v2539_v2 = vadd.f32 %v2538_v46, %v4281_v5 }
 0x39b   :  { %v2512_v59 = vpop.f32.mrf.mxu2 }
 0x39c   :  { %v2513_v41 = vadd.f32 %v2512_v59, %v4235_v18 }
 0x39e   :  { %2973 = vtanh.f32 %v2513_v41 }
 0x39f   :  { %v2541_v38 = vpop.f32.mrf.mxu3  ;;  %2975 = vtanh.f32 %v2510_v25 }
 0x3a0   :  { %v2542_v30 = vadd.f32 %v2541_v38, %v4235_v18 }
 0x3a2   :  { %2977 = vtanh.f32 %v2542_v30 }
 0x3a3   :  { %2979 = vtanh.f32 %v2507_v44 }
 0x3a4   :  { %2981 = vtanh.f32 %v2539_v2  ;;  %v2974_v1 = vpop.eup %2973 }
 0x3a5   :  { %2983 = vtanh.f32 %v2504_v6  ;;  %2612 = vmatpush.msrb.mxu2 %v2974_v1  ;;  %v2976_v23 = vpop.eup %2975 }
 0x3a6   :  { %2985 = vtanh.f32 %v2536_v4 }
 0x3a7   :  { %2987 = vtanh.f32 %v2533_v26  ;;  %2613 = vmatpush.msrb.mxu2 %v2976_v23 }
 0x3a8   :  { %v2978_v50 = vpop.eup %2977 }
 0x3a9   :  { %v2980_v5 = vpop.eup %2979  ;;  %2632 = vmatpush.msrb.mxu3 %v2978_v50 }
 0x3aa   :  { %v2982_v18 = vpop.eup %2981  ;;  %2614 = vmatpush.msrb.mxu2 %v2980_v5 }
 0x3ab   :  { %v2984_v10 = vpop.eup %2983  ;;  %2633 = vmatpush.msrb.mxu3 %v2982_v18 }
 0x3ac   :  { %v2986_v28 = vpop.eup %2985  ;;  %2615 = vmatpush.msrb.mxu2 %v2984_v10 }
 0x3ad   :  { %2634 = vmatpush.msrb.mxu3 %v2986_v28  ;;  %2762 = vmatmul.msk.f32.vlgmr.msrb.gmra.mxu2 %vm1024_vm10, %v4351_v32  ;;  %v2988_v62 = vpop.eup %2987 }
 0x3af   :  { %2635 = vmatpush.msrb.mxu3 %v2988_v62 }
 0x3b0   :  { %2763 = vmatmul.msk.f32.vlgmr.msrb.gmra.mxu3 %vm1024_vm10, %v4351_v32 }
 0x410   :  { %v2577_v51 = vpop.f32.mrf.mxu0 }
 0x411   :  { %v2597_v45 = vpop.f32.mrf.mxu1  ;;  %v2578_v33 = vadd.f32 %v2577_v51, %v4446_v47 }
 0x412   :  { %v2598_v40 = vadd.f32 %v2597_v45, %v4446_v47 }
 0x414   :  { %v2644_v34 = vrot.slane %v2598_v40, 4 }
 0x416   :  { %v2646_v24 = vsel %vm1427_vm7, %v2578_v33, %v2644_v34 }
 0x417   :  { %2650 = vst [vmem:[#allocation2 + $0x10] sm:$0xff] %v2646_v24 }
 0x430   :  { %v2617_v20 = vpop.f32.mrf.mxu2 }
 0x431   :  { %v2618_v32 = vadd.f32 %v2617_v20, %v4446_v47 }
 0x433   :  { %v2637_v15 = vpop.f32.mrf.mxu3 }
 0x434   :  { %v2638_v57 = vadd.f32 %v2637_v15, %v4446_v47 }
 0x436   :  { %v2645_v63 = vrot.slane %v2638_v57, 4 }
 0x438   :  { %v2647_v54 = vsel %vm1427_vm7, %v2618_v32, %v2645_v63 }
 0x439   :  { %2651 = vst [vmem:[#allocation2 + $0x18] sm:$0xff] %v2647_v54 }
 0x43a   :  { %2662 = dma.vmem_to_hbm [thread:$0]  %s2658_s28, 512, %s2660_s1, [#allocation3]  }
 0x43b   :  { %3021 = dma.done.wait [#allocation3], 512  }
 0x43c   :  { %3022 = vsyncadd [#allocation3], 4294966784 }
 0x43d   :  { %2667 = vsyncpa [#allocation3], 1 }

</bundles_post_ra>
